<compile_context>
chip_gen: v7x
topology: tpu7x:2x2x1
jax: 0.10.0
libtpu: 0.0.40
codegen_flags: <defaults>
</compile_context>

<pallas_src>
import math

import numpy as np

import jax
import jax.numpy as jnp
from jax.experimental import pallas as pl
from jax.experimental.pallas import tpu as pltpu

K_IN = 28 * 28 * 3   # 2352 input features (multiple of 8; used as a full block)
H1 = 128             # hidden 1
H2 = 64              # hidden 2 (PyTorch size)
H2_PAD = 128         # lane-aligned hidden 2 (zero padding is inert)


def _round_up(n, m):
    return ((n + m - 1) // m) * m


def mlp_kernel(x_ref, w1_ref, b1_ref, w2_ref, b2_ref, w3_ref, b3_ref, out_ref):
    # Layer 1: Linear(2352 -> 128) + ReLU.  The (optional) bf16 cast of the x
    # tile happens here on the VPU and is hidden under the streaming DMA.
    x = x_ref[...].astype(w1_ref.dtype)
    z1 = jnp.dot(x, w1_ref[...], preferred_element_type=jnp.float32)
    a1 = jnp.maximum(z1 + b1_ref[...], 0.0)                       # f32 [TB, 128]

    # Layer 2: Linear(128 -> 64, zero-padded to 128) + ReLU, all f32 (W2 is
    # VMEM-resident and DMA'd once, so bf16 here would save nothing).
    z2 = jnp.dot(a1, w2_ref[...], preferred_element_type=jnp.float32)
    a2 = jnp.maximum(z2 + b2_ref[...], 0.0)                       # f32 [TB, 128]

    # Layer 3: Linear(64 -> 1) + Sigmoid, computed as w3 @ a2^T (contract the
    # lane axis of both operands) so the result comes out lane-dense as
    # (1, TB) instead of a single-live-lane (TB, 1) column.
    z3 = jax.lax.dot_general(
        w3_ref[...], a2,
        dimension_numbers=(((1,), (1,)), ((), ())),
        preferred_element_type=jnp.float32) + b3_ref[...]          # f32 [1, TB]
    y_row = jax.nn.sigmoid(z3).astype(out_ref.dtype)               # [1, TB]

    # Replicate across the 8 sublanes of the (1, 8, TB) output block so the
    # writeback is a full, unmasked lane-dense tile (wrapper reads sublane 0).
    out_ref[...] = jnp.broadcast_to(y_row[None], out_ref.shape)

    # TODO(synk): the PyTorch module also stashes a1/a2 on `self` for activation
    # recording; expose them as extra (TB, 128) outputs if that is needed.


def prepare_params(w1, b1, w2, b2, w3, b3, *, matmul_dtype=jnp.bfloat16):
    """Lane-align the tiny hidden-2 dim and cast W1 once (outside the kernel).

    Weights are laid out [in, out] (y = x @ W + b, i.e. W = W_torch.T).  Only
    W1 — the large, layer-1 weight that pairs with the streamed x — is cast to
    `matmul_dtype`; everything else stays f32 (VMEM resident, negligible bytes).
    """
    w1p = jnp.asarray(w1, jnp.float32).astype(matmul_dtype)                 # (2352, 128)
    b1p = jnp.asarray(b1, jnp.float32).reshape(1, H1)
    w2p = jnp.zeros((H1, H2_PAD), jnp.float32).at[:, :H2].set(
        jnp.asarray(w2, jnp.float32))
    b2p = jnp.zeros((1, H2_PAD), jnp.float32).at[:, :H2].set(
        jnp.asarray(b2, jnp.float32).reshape(1, H2))
    w3p = jnp.zeros((1, H2_PAD), jnp.float32).at[:, :H2].set(
        jnp.asarray(w3, jnp.float32).reshape(1, H2))
    b3p = jnp.asarray(b3, jnp.float32).reshape(1, 1)
    return w1p, b1p, w2p, b2p, w3p, b3p


def simple_mlp_forward(x, prepared_params, *, block_b=512):
    """x: [B, 2352] float32 (or bf16). Returns sigmoid output [B, 1] float32."""
    w1p, b1p, w2p, b2p, w3p, b3p = prepared_params
    B, k = x.shape
    assert k == K_IN
    assert block_b % 8 == 0 and block_b > 0

    # Batch tile: multiple of 8 sublanes, capped by block_b.  For small/medium
    # batches make sure there are at least two tiles so both TensorCores of a
    # megacore part (v7x) get work on the "parallel" batch axis.
    tb = min(block_b, _round_up(B, 8))
    if B >= 16 and pl.cdiv(B, tb) < 2:
        tb = _round_up(pl.cdiv(B, 2), 8)
    num_tiles = pl.cdiv(B, tb)
    b_pad = num_tiles * tb

    # Only ragged batches need a (rows-only, same-dtype) pad so the last tile's
    # DMA stays in bounds; aligned batches stream x directly with no HBM copy.
    if b_pad != B:
        x = jnp.pad(x, ((0, b_pad - B), (0, 0)))

    resident = lambda i: (0, 0)   # weights / biases: same block every grid step
    out = pl.pallas_call(
        mlp_kernel,
        out_shape=jax.ShapeDtypeStruct((num_tiles, 8, tb), jnp.float32),
        grid_spec=pltpu.PrefetchScalarGridSpec(
            num_scalar_prefetch=0,
            grid=(num_tiles,),
            in_specs=[
                pl.BlockSpec((tb, K_IN), lambda i: (i, 0)),    # x: streamed tiles
                pl.BlockSpec((K_IN, H1), resident),            # W1 (matmul dtype)
                pl.BlockSpec((1, H1), resident),               # b1
                pl.BlockSpec((H1, H2_PAD), resident),          # W2 (f32)
                pl.BlockSpec((1, H2_PAD), resident),           # b2
                pl.BlockSpec((1, H2_PAD), resident),           # W3 row vector
                pl.BlockSpec((1, 1), resident),                # b3
            ],
            out_specs=pl.BlockSpec((1, 8, tb), lambda i: (i, 0, 0)),  # lane-dense
        ),
        compiler_params=pltpu.CompilerParams(
            dimension_semantics=("parallel",),
            # Covers the f32 x double-buffer at tb=512 (~10 MiB) plus weights
            # with headroom on every generation (raises v5e's 16 MiB scoped
            # default; well below v7x's 64 MiB physical VMEM).
            vmem_limit_bytes=40 * 1024 * 1024,
        ),
    )(x, w1p, b1p, w2p, b2p, w3p, b3p)

    # (num_tiles, 8, tb): every sublane holds the same row; take sublane 0.
    return out[:, 0, :].reshape(-1)[:B].reshape(B, 1)


def init_params(key):
    """Deterministic init mimicking torch.nn.Linear defaults (U[-1/sqrt(fan_in), +))."""
    def linear(k, fan_in, fan_out):
        kw, kb = jax.random.split(k)
        bound = 1.0 / math.sqrt(fan_in)
        w = jax.random.uniform(kw, (fan_in, fan_out), jnp.float32, -bound, bound)
        b = jax.random.uniform(kb, (fan_out,), jnp.float32, -bound, bound)
        return w, b

    k1, k2, k3 = jax.random.split(key, 3)
    w1, b1 = linear(k1, K_IN, H1)
    w2, b2 = linear(k2, H1, H2)
    w3, b3 = linear(k3, H2, 1)
    return w1, b1, w2, b2, w3, b3


def reference_forward_np(x, w1, b1, w2, b2, w3, b3):
    """float64 numpy reference with exact PyTorch forward semantics."""
    x, w1, b1, w2, b2, w3, b3 = (
        np.asarray(a, np.float64) for a in (x, w1, b1, w2, b2, w3, b3))
    a1 = np.maximum(x @ w1 + b1, 0.0)
    a2 = np.maximum(a1 @ w2 + b2, 0.0)
    z3 = a2 @ w3 + b3
    return 1.0 / (1.0 + np.exp(-z3))


if __name__ == "__main__":
    key = jax.random.PRNGKey(0)
    kx, kp = jax.random.split(key)
    params = init_params(kp)

    # Small batch, like the original script; tile-aligned -> zero-copy x path.
    B = 8
    x = jax.random.normal(kx, (B, K_IN), jnp.float32)
    ref = reference_forward_np(x, *params)

    # f32 matmul path (exact PyTorch dtype semantics modulo MXU f32 rounding).
    prep_f32 = prepare_params(*params, matmul_dtype=jnp.float32)
    out_f32 = jax.block_until_ready(simple_mlp_forward(x, prep_f32))
    assert out_f32.shape == (B, 1)
    assert np.allclose(np.asarray(out_f32, np.float64), ref, atol=2e-3, rtol=2e-3)

    # Perf-default path: bf16 layer-1 matmul, f32 accumulate + f32 elementwise.
    prep_bf16 = prepare_params(*params, matmul_dtype=jnp.bfloat16)
    out_bf16 = jax.block_until_ready(simple_mlp_forward(x, prep_bf16))
    assert out_bf16.shape == (B, 1)
    assert np.allclose(np.asarray(out_bf16, np.float64), ref, atol=3e-2, rtol=3e-2)

    # Multi-tile, ragged batch: exercises the pipelined grid (>1 step), the
    # v7x two-tile split (default block_b) and the tail-row padding path.
    B2 = 20
    x2 = jax.random.normal(jax.random.PRNGKey(1), (B2, K_IN), jnp.float32)
    ref2 = reference_forward_np(x2, *params)
    out2 = jax.block_until_ready(simple_mlp_forward(x2, prep_f32))               # tb=16, 2 tiles
    out3 = jax.block_until_ready(simple_mlp_forward(x2, prep_bf16, block_b=8))   # tb=8, 3 tiles
    assert out2.shape == (B2, 1) and out3.shape == (B2, 1)
    assert np.allclose(np.asarray(out2, np.float64), ref2, atol=2e-3, rtol=2e-3)
    assert np.allclose(np.asarray(out3, np.float64), ref2, atol=3e-2, rtol=3e-2)

    print("KERNEL_OK")
</pallas_src>

<mosaic_0001>
module attributes {stable_mosaic.version = 11 : i64} {
  func.func @mlp_kernel(%arg0: i32, %arg1: memref<8x2352xf32, #tpu.memory_space<vmem>>, %arg2: memref<2352x128xf32, #tpu.memory_space<vmem>>, %arg3: memref<1x128xf32, #tpu.memory_space<vmem>>, %arg4: memref<128x128xf32, #tpu.memory_space<vmem>>, %arg5: memref<1x128xf32, #tpu.memory_space<vmem>>, %arg6: memref<1x128xf32, #tpu.memory_space<vmem>>, %arg7: memref<1x1xf32, #tpu.memory_space<vmem>>, %arg8: memref<1x8x8xf32, #tpu.memory_space<vmem>>) attributes {dimension_semantics = [#tpu.dimension_semantics<parallel>], iteration_bounds = array<i64: 1>, scalar_prefetch = 0 : i64, scratch_operands = 0 : i64, tpu.core_type = #tpu.core_type<tc>, window_params = [{transform_indices = @transform_0, window_bounds = array<i64: 8, 2352>}, {pipeline_mode = #tpu.pipeline_mode<synchronous>, transform_indices = @transform_1, window_bounds = array<i64: 2352, 128>}, {pipeline_mode = #tpu.pipeline_mode<synchronous>, transform_indices = @transform_2, window_bounds = array<i64: 1, 128>}, {pipeline_mode = #tpu.pipeline_mode<synchronous>, transform_indices = @transform_3, window_bounds = array<i64: 128, 128>}, {pipeline_mode = #tpu.pipeline_mode<synchronous>, transform_indices = @transform_4, window_bounds = array<i64: 1, 128>}, {pipeline_mode = #tpu.pipeline_mode<synchronous>, transform_indices = @transform_5, window_bounds = array<i64: 1, 128>}, {pipeline_mode = #tpu.pipeline_mode<synchronous>, transform_indices = @transform_6, window_bounds = array<i64: 1, 1>}, {transform_indices = @transform_7, window_bounds = array<i64: 1, 8, 8>}]} {
    %c0 = arith.constant 0 : index
    %c0_0 = arith.constant 0 : index
    %0 = vector.load %arg1[%c0, %c0_0] : memref<8x2352xf32, #tpu.memory_space<vmem>>, vector<8x2352xf32>
    %c0_1 = arith.constant 0 : index
    %c0_2 = arith.constant 0 : index
    %1 = vector.load %arg2[%c0_1, %c0_2] : memref<2352x128xf32, #tpu.memory_space<vmem>>, vector<2352x128xf32>
    %cst = arith.constant dense<0.000000e+00> : vector<8x128xf32>
    %2 = tpu.matmul %0, %1, %cst {dimension_numbers = #tpu.dot_dimension_numbers<[1], [0], [0], [1], [0, 0, 1, 1], [], []>} : vector<8x2352xf32>, vector<2352x128xf32>, vector<8x128xf32> -> vector<8x128xf32>
    %c0_3 = arith.constant 0 : index
    %c0_4 = arith.constant 0 : index
    %3 = vector.load %arg3[%c0_3, %c0_4] : memref<1x128xf32, #tpu.memory_space<vmem>>, vector<1x128xf32>
    %4 = vector.broadcast %3 : vector<1x128xf32> to vector<8x128xf32>
    %5 = arith.addf %2, %4 : vector<8x128xf32>
    %cst_5 = arith.constant 0.000000e+00 : f32
    %6 = vector.broadcast %cst_5 : f32 to vector<8x128xf32>
    %7 = arith.maximumf %5, %6 : vector<8x128xf32>
    %c0_6 = arith.constant 0 : index
    %c0_7 = arith.constant 0 : index
    %8 = vector.load %arg4[%c0_6, %c0_7] : memref<128x128xf32, #tpu.memory_space<vmem>>, vector<128x128xf32>
    %cst_8 = arith.constant dense<0.000000e+00> : vector<8x128xf32>
    %9 = tpu.matmul %7, %8, %cst_8 {dimension_numbers = #tpu.dot_dimension_numbers<[1], [0], [0], [1], [0, 0, 1, 1], [], []>} : vector<8x128xf32>, vector<128x128xf32>, vector<8x128xf32> -> vector<8x128xf32>
    %c0_9 = arith.constant 0 : index
    %c0_10 = arith.constant 0 : index
    %10 = vector.load %arg5[%c0_9, %c0_10] : memref<1x128xf32, #tpu.memory_space<vmem>>, vector<1x128xf32>
    %11 = vector.broadcast %10 : vector<1x128xf32> to vector<8x128xf32>
    %12 = arith.addf %9, %11 : vector<8x128xf32>
    %cst_11 = arith.constant 0.000000e+00 : f32
    %13 = vector.broadcast %cst_11 : f32 to vector<8x128xf32>
    %14 = arith.maximumf %12, %13 : vector<8x128xf32>
    %c0_12 = arith.constant 0 : index
    %c0_13 = arith.constant 0 : index
    %15 = vector.load %arg6[%c0_12, %c0_13] : memref<1x128xf32, #tpu.memory_space<vmem>>, vector<1x128xf32>
    %cst_14 = arith.constant dense<0.000000e+00> : vector<1x8xf32>
    %16 = tpu.matmul %15, %14, %cst_14 {dimension_numbers = #tpu.dot_dimension_numbers<[1], [1], [0], [0], [0, 0, 1, 0], [], []>} : vector<1x128xf32>, vector<8x128xf32>, vector<1x8xf32> -> vector<1x8xf32>
    %c0_15 = arith.constant 0 : index
    %c0_16 = arith.constant 0 : index
    %17 = vector.load %arg7[%c0_15, %c0_16] : memref<1x1xf32, #tpu.memory_space<vmem>>, vector<1x1xf32>
    %18 = vector.broadcast %17 : vector<1x1xf32> to vector<1x8xf32>
    %19 = arith.addf %16, %18 : vector<1x8xf32>
    %20 = arith.negf %19 : vector<1x8xf32>
    %21 = math.exp %20 : vector<1x8xf32>
    %cst_17 = arith.constant 1.000000e+00 : f32
    %22 = vector.broadcast %cst_17 : f32 to vector<1x8xf32>
    %23 = arith.addf %22, %21 : vector<1x8xf32>
    %24 = arith.divf %22, %23 : vector<1x8xf32>
    %25 = vector.shape_cast %24 : vector<1x8xf32> to vector<1x1x8xf32>
    %26 = vector.shape_cast %25 : vector<1x1x8xf32> to vector<1x1x8xf32>
    %27 = vector.broadcast %26 : vector<1x1x8xf32> to vector<1x8x8xf32>
    %c0_18 = arith.constant 0 : index
    %c0_19 = arith.constant 0 : index
    %c0_20 = arith.constant 0 : index
    %28 = vector.load %arg8[%c0_18, %c0_19, %c0_20] : memref<1x8x8xf32, #tpu.memory_space<vmem>>, vector<1x8x8xf32>
    tpu.vector_store %arg8[%c0_18, %c0_19, %c0_20], %27 {strides = array<i32>} : memref<1x8x8xf32, #tpu.memory_space<vmem>>, vector<1x8x8xf32>,
    return
  }
  func.func @transform_0(%arg0: i32) -> (i32, i32) {
    %c0_i32 = arith.constant 0 : i32
    %c0_i32_0 = arith.constant 0 : i32
    return %arg0, %c0_i32 : i32, i32
  }
  func.func @transform_1(%arg0: i32) -> (i32, i32) {
    %c0_i32 = arith.constant 0 : i32
    %c0_i32_0 = arith.constant 0 : i32
    %c0_i32_1 = arith.constant 0 : i32
    return %c0_i32, %c0_i32_0 : i32, i32
  }
  func.func @transform_2(%arg0: i32) -> (i32, i32) {
    %c0_i32 = arith.constant 0 : i32
    %c0_i32_0 = arith.constant 0 : i32
    %c0_i32_1 = arith.constant 0 : i32
    return %c0_i32, %c0_i32_0 : i32, i32
  }
  func.func @transform_3(%arg0: i32) -> (i32, i32) {
    %c0_i32 = arith.constant 0 : i32
    %c0_i32_0 = arith.constant 0 : i32
    %c0_i32_1 = arith.constant 0 : i32
    return %c0_i32, %c0_i32_0 : i32, i32
  }
  func.func @transform_4(%arg0: i32) -> (i32, i32) {
    %c0_i32 = arith.constant 0 : i32
    %c0_i32_0 = arith.constant 0 : i32
    %c0_i32_1 = arith.constant 0 : i32
    return %c0_i32, %c0_i32_0 : i32, i32
  }
  func.func @transform_5(%arg0: i32) -> (i32, i32) {
    %c0_i32 = arith.constant 0 : i32
    %c0_i32_0 = arith.constant 0 : i32
    %c0_i32_1 = arith.constant 0 : i32
    return %c0_i32, %c0_i32_0 : i32, i32
  }
  func.func @transform_6(%arg0: i32) -> (i32, i32) {
    %c0_i32 = arith.constant 0 : i32
    %c0_i32_0 = arith.constant 0 : i32
    %c0_i32_1 = arith.constant 0 : i32
    return %c0_i32, %c0_i32_0 : i32, i32
  }
  func.func @transform_7(%arg0: i32) -> (i32, i32, i32) {
    %c0_i32 = arith.constant 0 : i32
    %c0_i32_0 = arith.constant 0 : i32
    %c0_i32_1 = arith.constant 0 : i32
    return %arg0, %c0_i32, %c0_i32_0 : i32, i32, i32
  }
}

</mosaic_0001>

<bundles_post_ra>
// kernel: tpu_custom_call.1
= control target key start
LH: loop header
LB: loop body
LE: loop exit
PB: predicated region body
PF: predicated region fallthrough
CT: control target
= control target key end

     0   :  { %s2390_s0 = inlined_call_operand.hbm [shape: f32[8,2352], index: 0, kind: input, shape index: {}]   ;;  %s2391_s1 = inlined_call_operand.hbm [shape: f32[2352,128], index: 1, kind: input, shape index: {}]   ;;  %s2392_s2 = inlined_call_operand.hbm [shape: f32[1,128], index: 2, kind: input, shape index: {}]   ;;  %s2393_s3 = inlined_call_operand.hbm [shape: f32[128,128], index: 3, kind: input, shape index: {}]   ;;  %s2394_s4 = inlined_call_operand.hbm [shape: f32[1,128], index: 4, kind: input, shape index: {}]   ;;  %s2395_s5 = inlined_call_operand.hbm [shape: f32[1,128], index: 5, kind: input, shape index: {}]   ;;  %s2396_s6 = inlined_call_operand.<no memory space> [shape: f32[1,1], index: 6, kind: input, shape index: {}]   ;;  %s2397_s7 = inlined_call_operand.hbm [shape: f32[1,8,8], index: 7, kind: output, shape index: {}]  }
   0x1   :  { %v12_v0 = vstv %s2396_s6 }
   0x2   :  { %13 = vst [vmem:[#allocation2] sm:$0x1] %v12_v0 }
   0x3   :  { %14 = vsyncpa [#allocation4], 0 }
   0x4   :  { %15 = vsyncpa [#allocation7], 0 }
   0x5   :  { %16 = vsyncpa [#allocation10], 0 }
   0x6   :  { %17 = vsyncpa [#allocation13], 0 }
   0x7   :  { %18 = vsyncpa [#allocation5], 0  ;;  %s2236_s26 = smov [#allocation6]   ;;  %s2072_s30 = scalar_lea.hbm %s2391_s1, 37632 }
   0x8   :  { %s34_s27 = sshll.u32 %s2236_s26, 4  ;;  %p2073_p0 = scmp.ne.s32.totalorder %s2391_s1, %s2072_s30  ;;  %s35_s27 = int_to_ptr.vmem [resolvable:$true] %s34_s27 }
   0x9   :  { %p2076_p1 = scmp.lt.u32.totalorder %s2072_s30, %s2391_s1 }
   0xb   :  { %p2078_p2 = pnand %p2076_p1, %p2073_p0 }
   0xd   :  { %2081 = shalt.err (!%p2078_p2)
}
   0xe   :  { %s2082_s6 = scalar_lea.vmem %s35_s27, 37632  ;;  %p2087_p4 = scmp.lt.s32.totalorder %s35_s27, %s35_s27 }
   0xf   :  { %p2083_p3 = scmp.ne.s32.totalorder %s35_s27, %s2082_s6  ;;  %p2088_p5 = scmp.lt.s32.totalorder %s2082_s6, %s2082_s6 }
  0x11   :  { %p2089_p6 = por %p2088_p5, %p2087_p4 }
  0x13   :  { %p2090_p7 = pnand %p2089_p6, %p2083_p3 }
  0x15   :  { %2093 = shalt.err (!%p2090_p7)
}
  0x16   :  { %s2237_s12 = smov 128   ;;  %s2238_s13 = smov 8  }
  0x17   :  { %40 = dma.hbm_to_vmem [thread:$0]  %s2391_s1, 37632, %s35_s27, [#allocation7], %s2237_s12, %s2237_s12, %s2238_s13  }
  0x18   :  { %s2239_s16 = smov [#allocation9]   ;;  %s2240_s18 = smov [#allocation3]  }
  0x19   :  { %s56_s17 = sshll.u32 %s2239_s16, 4  ;;  %s25_s19 = sshll.u32 %s2240_s18, 4  ;;  %s57_s17 = int_to_ptr.vmem [resolvable:$true] %s56_s17  ;;  %s26_s19 = int_to_ptr.vmem [resolvable:$true] %s25_s19 }
  0x1a   :  { %s2094_s22 = scalar_lea.hbm %s2393_s3, 2048 }
  0x1b   :  { %p2095_p8 = scmp.ne.s32.totalorder %s2393_s3, %s2094_s22  ;;  %p2098_p9 = scmp.lt.u32.totalorder %s2094_s22, %s2393_s3 }
  0x1d   :  { %p2100_p10 = pnand %p2098_p9, %p2095_p8 }
  0x1f   :  { %2103 = shalt.err (!%p2100_p10)
}
  0x20   :  { %s2104_s1 = scalar_lea.vmem %s57_s17, 2048  ;;  %p2109_p12 = scmp.lt.s32.totalorder %s57_s17, %s57_s17 }
  0x21   :  { %p2105_p11 = scmp.ne.s32.totalorder %s57_s17, %s2104_s1  ;;  %p2110_p13 = scmp.lt.s32.totalorder %s2104_s1, %s2104_s1 }
  0x23   :  { %p2111_p0 = por %p2110_p13, %p2109_p12 }
  0x25   :  { %p2112_p1 = pnand %p2111_p0, %p2105_p11 }
  0x27   :  { %2115 = shalt.err (!%p2112_p1)
}
  0x28   :  { %62 = dma.hbm_to_vmem [thread:$0]  %s2393_s3, 2048, %s57_s17, [#allocation10], %s2237_s12, %s2237_s12, %s2238_s13  }
  0x29   :  { %s2116_s8 = scalar_lea.hbm %s2390_s0, 2432 }
  0x2a   :  { %p2117_p2 = scmp.ne.s32.totalorder %s2390_s0, %s2116_s8  ;;  %p2120_p3 = scmp.lt.u32.totalorder %s2116_s8, %s2390_s0 }
  0x2c   :  { %p2122_p4 = pnand %p2120_p3, %p2117_p2 }
  0x2e   :  { %2125 = shalt.err (!%p2122_p4)
}
  0x2f   :  { %s2126_s14 = scalar_lea.vmem %s26_s19, 2432  ;;  %p2131_p6 = scmp.lt.s32.totalorder %s26_s19, %s26_s19 }
  0x30   :  { %p2127_p5 = scmp.ne.s32.totalorder %s26_s19, %s2126_s14  ;;  %p2132_p7 = scmp.lt.s32.totalorder %s2126_s14, %s2126_s14 }
  0x32   :  { %p2133_p8 = por %p2132_p7, %p2131_p6 }
  0x34   :  { %p2134_p9 = pnand %p2133_p8, %p2127_p5 }
  0x36   :  { %2137 = shalt.err (!%p2134_p9)
}
  0x37   :  { %28 = dma.hbm_to_vmem [thread:$0]  %s2390_s0, 2432, %s26_s19, [#allocation4]  }
  0x38   :  { %s2241_s13 = smov [#allocation8]   ;;  %s2242_s16 = smov [#allocation11]  }
  0x39   :  { %s47_s15 = sshll.u32 %s2241_s13, 4  ;;  %s69_s17 = sshll.u32 %s2242_s16, 4  ;;  %s48_s15 = int_to_ptr.vmem [resolvable:$true] %s47_s15  ;;  %s70_s17 = int_to_ptr.vmem [resolvable:$true] %s69_s17 }
  0x3a   :  { %s2138_s21 = scalar_lea.hbm %s2392_s2, 16 }
  0x3b   :  { %p2139_p10 = scmp.ne.s32.totalorder %s2392_s2, %s2138_s21  ;;  %p2142_p11 = scmp.lt.u32.totalorder %s2138_s21, %s2392_s2 }
  0x3d   :  { %p2144_p12 = pnand %p2142_p11, %p2139_p10 }
  0x3f   :  { %2147 = shalt.err (!%p2144_p12)
}
  0x40   :  { %s2148_s0 = scalar_lea.vmem %s48_s15, 16  ;;  %s2152_s19 = scalar_lea.vmem %s48_s15, 32 }
  0x41   :  { %p2149_p13 = scmp.ne.s32.totalorder %s48_s15, %s2148_s0  ;;  %p2153_p0 = scmp.lt.s32.totalorder %s48_s15, %s48_s15 }
  0x42   :  { %p2154_p1 = scmp.lt.s32.totalorder %s2152_s19, %s2148_s0 }
  0x44   :  { %p2155_p2 = por %p2154_p1, %p2153_p0 }
  0x46   :  { %p2156_p3 = pnand %p2155_p2, %p2149_p13 }
  0x48   :  { %2159 = shalt.err (!%p2156_p3)
}
  0x49   :  { %50 = dma.hbm_to_vmem [thread:$0]  %s2392_s2, 16, %s48_s15, [#allocation7]  }
  0x4a   :  { %s2160_s29 = scalar_lea.hbm %s2394_s4, 16 }
  0x4b   :  { %p2161_p4 = scmp.ne.s32.totalorder %s2394_s4, %s2160_s29  ;;  %p2164_p5 = scmp.lt.u32.totalorder %s2160_s29, %s2394_s4 }
  0x4d   :  { %p2166_p6 = pnand %p2164_p5, %p2161_p4 }
  0x4f   :  { %2169 = shalt.err (!%p2166_p6)
}
  0x50   :  { %s2170_s11 = scalar_lea.vmem %s70_s17, 16  ;;  %s2174_s6 = scalar_lea.vmem %s70_s17, 32 }
  0x51   :  { %p2171_p7 = scmp.ne.s32.totalorder %s70_s17, %s2170_s11  ;;  %p2175_p8 = scmp.lt.s32.totalorder %s70_s17, %s70_s17 }
  0x52   :  { %p2176_p9 = scmp.lt.s32.totalorder %s2174_s6, %s2170_s11 }
  0x54   :  { %p2177_p10 = por %p2176_p9, %p2175_p8 }
  0x56   :  { %p2178_p11 = pnand %p2177_p10, %p2171_p7 }
  0x58   :  { %2181 = shalt.err (!%p2178_p11)
}
  0x59   :  { %72 = dma.hbm_to_vmem [thread:$0]  %s2394_s4, 16, %s70_s17, [#allocation10]  }
  0x5a   :  { %s2243_s3 = smov [#allocation12]   ;;  %s2182_s16 = scalar_lea.hbm %s2395_s5, 16 }
  0x5b   :  { %s79_s12 = sshll.u32 %s2243_s3, 4  ;;  %p2183_p12 = scmp.ne.s32.totalorder %s2395_s5, %s2182_s16  ;;  %s80_s12 = int_to_ptr.vmem [resolvable:$true] %s79_s12 }
  0x5c   :  { %p2186_p13 = scmp.lt.u32.totalorder %s2182_s16, %s2395_s5 }
  0x5e   :  { %p2188_p0 = pnand %p2186_p13, %p2183_p12 }
  0x60   :  { %2191 = shalt.err (!%p2188_p0)
}
  0x61   :  { %s2192_s23 = scalar_lea.vmem %s80_s12, 16  ;;  %s2196_s4 = scalar_lea.vmem %s80_s12, 32 }
  0x62   :  { %p2193_p1 = scmp.ne.s32.totalorder %s80_s12, %s2192_s23  ;;  %p2197_p2 = scmp.lt.s32.totalorder %s80_s12, %s80_s12 }
  0x63   :  { %p2198_p3 = scmp.lt.s32.totalorder %s2196_s4, %s2192_s23 }
  0x65   :  { %p2199_p4 = por %p2198_p3, %p2197_p2 }
  0x67   :  { %p2200_p5 = pnand %p2199_p4, %p2193_p1 }
  0x69   :  { %2203 = shalt.err (!%p2200_p5)
}
  0x6a   :  { %82 = dma.hbm_to_vmem [thread:$0]  %s2395_s5, 16, %s80_s12, [#allocation13]  }
  0x6b   :  { %2226 = dma.done.wait [#allocation4], 2432  }
  0x6c   :  { %2227 = vsyncadd [#allocation4], 4294964864 }
  0x6d   :  { %2228 = dma.done.wait [#allocation7], 37648  }
  0x6e   :  { %2229 = vsyncadd [#allocation7], 4294929648 }
  0x6f   :  { %2230 = dma.done.wait [#allocation10], 2064  }
  0x70   :  { %2231 = vsyncadd [#allocation10], 4294965232 }
  0x71   :  { %2232 = dma.done.wait [#allocation13], 16  }
  0x72   :  { %2233 = vsyncadd [#allocation13], 4294967280  ;;  %v138_v1 = vld [vmem:[#allocation6 + $0x80] sm:$0xff]  ;;  %v139_v2 = vld [vmem:[#allocation6 + $0x88] sm:$0xff]  ;;  %vm2245_vm0 = vmmov 0   ;;  %vm423_vm1 = vcmask 392192  }
  0x73   :  { %v122_v3 = vld [vmem:[#allocation6] sm:$0xff]  ;;  %v1733_v4 = vpack.c.bf16 %v139_v2, %v138_v1  ;;  %v123_v5 = vld [vmem:[#allocation6 + $0x8] sm:$0xff]  ;;  %v140_v12 = vld [vmem:[#allocation6 + $0x90] sm:$0xff]  ;;  %s2248_s5 = smov [#allocation14]   ;;  %vm1313_vm2 = vcmask 64512  }
  0x74   :  { %v170_v6 = vld [vmem:[#allocation6 + $0x180] sm:$0xff]  ;;  %v171_v7 = vld [vmem:[#allocation6 + $0x188] sm:$0xff]  ;;  %v1735_v8 = vpack.c.bf16 %v123_v5, %v122_v3  ;;  %v141_v14 = vld [vmem:[#allocation6 + $0x98] sm:$0xff]  ;;  %s1321_s25 = sshll.u32 %s2248_s5, 4  ;;  %s1322_s25 = int_to_ptr.vmem [resolvable:$true] %s1321_s25 }
  0x75   :  { %v1765_v9 = vpack.c.bf16 %v171_v7, %v170_v6  ;;  %v154_v10 = vld [vmem:[#allocation6 + $0x100] sm:$0xff]  ;;  %v155_v11 = vld [vmem:[#allocation6 + $0x108] sm:$0xff]  ;;  %1734 = vmatprep.subr.bf16.mxu0 %v1733_v4  ;;  %v124_v15 = vld [vmem:[#allocation6 + $0x10] sm:$0xff]  ;;  %v1737_v17 = vpack.c.bf16 %v141_v14, %v140_v12  ;;  %s2204_s0 = scalar_lea.vmem %s1322_s25, 128  ;;  %p2209_p7 = scmp.lt.s32.totalorder %s1322_s25, %s1322_s25 }
  0x76   :  { %v1767_v13 = vpack.c.bf16 %v155_v11, %v154_v10  ;;  %v125_v16 = vld [vmem:[#allocation6 + $0x18] sm:$0xff]  ;;  %1736 = vmatpush3.bf16.msra.mxu0 %v1735_v8  ;;  %v172_v19 = vld [vmem:[#allocation6 + $0x190] sm:$0xff]  ;;  %v142_v24 = vld [vmem:[#allocation6 + $0xa0] sm:$0xff]  ;;  %p2205_p6 = scmp.ne.s32.totalorder %s1322_s25, %s2204_s0  ;;  %p2210_p8 = scmp.lt.s32.totalorder %s2204_s0, %s2204_s0 }
  0x77   :  { %1766 = vmatprep.subr.bf16.mxu1 %v1765_v9  ;;  %v1739_v18 = vpack.c.bf16 %v125_v16, %v124_v15  ;;  %v173_v20 = vld [vmem:[#allocation6 + $0x198] sm:$0xff]  ;;  %v156_v21 = vld [vmem:[#allocation6 + $0x110] sm:$0xff]  ;;  %v143_v25 = vld [vmem:[#allocation6 + $0xa8] sm:$0xff]  ;;  %1738 = vmatprep.subr.bf16.mxu0 %v1737_v17 }
  0x78   :  { %1768 = vmatpush3.bf16.msra.mxu1 %v1767_v13  ;;  %v1769_v22 = vpack.c.bf16 %v173_v20, %v172_v19  ;;  %v157_v23 = vld [vmem:[#allocation6 + $0x118] sm:$0xff]  ;;  %v1741_v27 = vpack.c.bf16 %v143_v25, %v142_v24  ;;  %v126_v28 = vld [vmem:[#allocation6 + $0x20] sm:$0xff]  ;;  %v127_v29 = vld [vmem:[#allocation6 + $0x28] sm:$0xff]  ;;  %p2211_p9 = por %p2210_p8, %p2209_p7 }
  0x79   :  { %v1771_v26 = vpack.c.bf16 %v157_v23, %v156_v21  ;;  %v174_v30 = vld [vmem:[#allocation6 + $0x1a0] sm:$0xff]  ;;  %v175_v31 = vld [vmem:[#allocation6 + $0x1a8] sm:$0xff]  ;;  %v1743_v34 = vpack.c.bf16 %v127_v29, %v126_v28  ;;  %v144_v36 = vld [vmem:[#allocation6 + $0xb0] sm:$0xff] }
  0x7a   :  { %1770 = vmatprep.subr.bf16.mxu1 %v1769_v22  ;;  %v158_v32 = vld [vmem:[#allocation6 + $0x120] sm:$0xff]  ;;  %v159_v33 = vld [vmem:[#allocation6 + $0x128] sm:$0xff]  ;;  %1740 = vmatpush3.bf16.msra.mxu0 %v1739_v18  ;;  %v1773_v35 = vpack.c.bf16 %v175_v31, %v174_v30  ;;  %v145_v37 = vld [vmem:[#allocation6 + $0xb8] sm:$0xff]  ;;  %p2212_p10 = pnand %p2211_p9, %p2205_p6 }
  0x7b   :  { %v128_v38 = vld [vmem:[#allocation6 + $0x30] sm:$0xff]  ;;  %1742 = vmatprep.subr.bf16.mxu0 %v1741_v27  ;;  %v1775_v39 = vpack.c.bf16 %v159_v33, %v158_v32  ;;  %v1745_v40 = vpack.c.bf16 %v145_v37, %v144_v36  ;;  %v129_v41 = vld [vmem:[#allocation6 + $0x38] sm:$0xff]  ;;  %v146_v47 = vld [vmem:[#allocation6 + $0xc0] sm:$0xff] }
  0x7c   :  { %1772 = vmatpush3.bf16.msra.mxu1 %v1771_v26  ;;  %v176_v42 = vld [vmem:[#allocation6 + $0x1b0] sm:$0xff]  ;;  %v177_v43 = vld [vmem:[#allocation6 + $0x1b8] sm:$0xff]  ;;  %v147_v48 = vld [vmem:[#allocation6 + $0xc8] sm:$0xff]  ;;  %v1747_v49 = vpack.c.bf16 %v129_v41, %v128_v38 }
  0x7d   :  { %1774 = vmatprep.subr.bf16.mxu1 %v1773_v35  ;;  %v1777_v44 = vpack.c.bf16 %v177_v43, %v176_v42  ;;  %v160_v45 = vld [vmem:[#allocation6 + $0x130] sm:$0xff]  ;;  %v161_v46 = vld [vmem:[#allocation6 + $0x138] sm:$0xff]  ;;  %v178_v50 = vld [vmem:[#allocation6 + $0x1c0] sm:$0xff]  ;;  %v1749_v53 = vpack.c.bf16 %v147_v48, %v146_v47 }
  0x7e   :  { %1744 = vmatpush3.bf16.msra.mxu0 %v1743_v34  ;;  %v179_v51 = vld [vmem:[#allocation6 + $0x1c8] sm:$0xff]  ;;  %v1779_v52 = vpack.c.bf16 %v161_v46, %v160_v45  ;;  %v130_v54 = vld [vmem:[#allocation6 + $0x40] sm:$0xff]  ;;  %v148_v59 = vld [vmem:[#allocation6 + $0xd0] sm:$0xff] }
  0x7f   :  { %1746 = vmatprep.subr.bf16.mxu0 %v1745_v40  ;;  %v131_v55 = vld [vmem:[#allocation6 + $0x48] sm:$0xff]  ;;  %v162_v56 = vld [vmem:[#allocation6 + $0x140] sm:$0xff]  ;;  %v1781_v57 = vpack.c.bf16 %v179_v51, %v178_v50  ;;  %v149_v60 = vld [vmem:[#allocation6 + $0xd8] sm:$0xff] }
  0x80   :  { %1776 = vmatpush3.bf16.msra.mxu1 %v1775_v39  ;;  %v163_v58 = vld [vmem:[#allocation6 + $0x148] sm:$0xff]  ;;  %v180_v61 = vld [vmem:[#allocation6 + $0x1d0] sm:$0xff]  ;;  %v181_v62 = vld [vmem:[#allocation6 + $0x1d8] sm:$0xff]  ;;  %v1751_v63 = vpack.c.bf16 %v131_v55, %v130_v54  ;;  %v1753_v1 = vpack.c.bf16 %v149_v60, %v148_v59 }
  0x81   :  { %1778 = vmatprep.subr.bf16.mxu1 %v1777_v44  ;;  %v1783_v0 = vpack.c.bf16 %v163_v58, %v162_v56  ;;  %v132_v2 = vld [vmem:[#allocation6 + $0x50] sm:$0xff]  ;;  %v133_v3 = vld [vmem:[#allocation6 + $0x58] sm:$0xff]  ;;  %v1785_v5 = vpack.c.bf16 %v181_v62, %v180_v61  ;;  %v150_v7 = vld [vmem:[#allocation6 + $0xe0] sm:$0xff] }
  0x82   :  { %1748 = vmatpush3.bf16.msra.mxu0 %v1747_v49  ;;  %v164_v4 = vld [vmem:[#allocation6 + $0x150] sm:$0xff]  ;;  %v165_v6 = vld [vmem:[#allocation6 + $0x158] sm:$0xff]  ;;  %v151_v8 = vld [vmem:[#allocation6 + $0xe8] sm:$0xff]  ;;  %v1755_v11 = vpack.c.bf16 %v133_v3, %v132_v2 }
  0x83   :  { %1750 = vmatprep.subr.bf16.mxu0 %v1749_v53  ;;  %v182_v9 = vld [vmem:[#allocation6 + $0x1e0] sm:$0xff]  ;;  %v183_v10 = vld [vmem:[#allocation6 + $0x1e8] sm:$0xff]  ;;  %v104_v13 = vld [vmem:[#allocation3 + $0x8] sm:$0xff]  ;;  %v1787_v14 = vpack.c.bf16 %v165_v6, %v164_v4  ;;  %v1757_v15 = vpack.c.bf16 %v151_v8, %v150_v7 }
  0x84   :  { %1780 = vmatpush3.bf16.msra.mxu1 %v1779_v52  ;;  %v134_v12 = vld [vmem:[#allocation6 + $0x60] sm:$0xff]  ;;  %v135_v16 = vld [vmem:[#allocation6 + $0x68] sm:$0xff]  ;;  %v1789_v19 = vpack.c.bf16 %v183_v10, %v182_v9  ;;  %v152_v20 = vld [vmem:[#allocation6 + $0xf0] sm:$0xff]  ;;  %491 = vmatprep.mubr.f32.mxu0 %v104_v13 }
  0x85   :  { %1782 = vmatprep.subr.bf16.mxu1 %v1781_v57  ;;  %v166_v17 = vld [vmem:[#allocation6 + $0x160] sm:$0xff]  ;;  %v167_v18 = vld [vmem:[#allocation6 + $0x168] sm:$0xff]  ;;  %v153_v21 = vld [vmem:[#allocation6 + $0xf8] sm:$0xff]  ;;  %v1759_v25 = vpack.c.bf16 %v135_v16, %v134_v12 }
  0x86   :  { %1752 = vmatpush3.bf16.msra.mxu0 %v1751_v63  ;;  %v106_v22 = vld [vmem:[#allocation3 + $0x18] sm:$0xff]  ;;  %v184_v23 = vld [vmem:[#allocation6 + $0x1f0] sm:$0xff]  ;;  %v185_v24 = vld [vmem:[#allocation6 + $0x1f8] sm:$0xff]  ;;  %v1791_v26 = vpack.c.bf16 %v167_v18, %v166_v17  ;;  %v1761_v27 = vpack.c.bf16 %v153_v21, %v152_v20 }
  0x87   :  { %1754 = vmatprep.subr.bf16.mxu0 %v1753_v1  ;;  %561 = vmatprep.mubr.f32.mxu1 %v106_v22  ;;  %v136_v28 = vld [vmem:[#allocation6 + $0x70] sm:$0xff]  ;;  %v137_v29 = vld [vmem:[#allocation6 + $0x78] sm:$0xff]  ;;  %v1793_v31 = vpack.c.bf16 %v185_v24, %v184_v23  ;;  %v202_v33 = vld [vmem:[#allocation6 + $0x280] sm:$0xff] }
  0x88   :  { %1784 = vmatpush3.bf16.msra.mxu1 %v1783_v0  ;;  %v168_v30 = vld [vmem:[#allocation6 + $0x170] sm:$0xff]  ;;  %v169_v32 = vld [vmem:[#allocation6 + $0x178] sm:$0xff]  ;;  %v203_v34 = vld [vmem:[#allocation6 + $0x288] sm:$0xff]  ;;  %v1763_v37 = vpack.c.bf16 %v137_v29, %v136_v28 }
  0x89   :  { %1786 = vmatprep.subr.bf16.mxu1 %v1785_v5  ;;  %v234_v35 = vld [vmem:[#allocation6 + $0x380] sm:$0xff]  ;;  %v235_v36 = vld [vmem:[#allocation6 + $0x388] sm:$0xff]  ;;  %v1795_v38 = vpack.c.bf16 %v169_v32, %v168_v30  ;;  %v1797_v39 = vpack.c.bf16 %v203_v34, %v202_v33  ;;  %v204_v45 = vld [vmem:[#allocation6 + $0x290] sm:$0xff] }
  0x8a   :  { %1756 = vmatpush3.bf16.msra.mxu0 %v1755_v11  ;;  %v186_v40 = vld [vmem:[#allocation6 + $0x200] sm:$0xff]  ;;  %v187_v41 = vld [vmem:[#allocation6 + $0x208] sm:$0xff]  ;;  %v1829_v43 = vpack.c.bf16 %v235_v36, %v234_v35  ;;  %v205_v46 = vld [vmem:[#allocation6 + $0x298] sm:$0xff] }
  0x8b   :  { %1758 = vmatprep.subr.bf16.mxu0 %v1757_v15  ;;  %v218_v42 = vld [vmem:[#allocation6 + $0x300] sm:$0xff]  ;;  %v219_v44 = vld [vmem:[#allocation6 + $0x308] sm:$0xff]  ;;  %v236_v47 = vld [vmem:[#allocation6 + $0x390] sm:$0xff]  ;;  %v1799_v50 = vpack.c.bf16 %v187_v41, %v186_v40  ;;  %v1801_v53 = vpack.c.bf16 %v205_v46, %v204_v45 }
  0x8c   :  { %1788 = vmatpush3.bf16.msra.mxu1 %v1787_v14  ;;  %v237_v48 = vld [vmem:[#allocation6 + $0x398] sm:$0xff]  ;;  %v103_v49 = vld [vmem:[#allocation3] sm:$0xff]  ;;  %v1831_v52 = vpack.c.bf16 %v219_v44, %v218_v42  ;;  %v188_v54 = vld [vmem:[#allocation6 + $0x210] sm:$0xff] }
  0x8d   :  { %1790 = vmatprep.subr.bf16.mxu1 %v1789_v19  ;;  %v105_v51 = vld [vmem:[#allocation3 + $0x10] sm:$0xff]  ;;  %v220_v56 = vld [vmem:[#allocation6 + $0x310] sm:$0xff]  ;;  %v1833_v57 = vpack.c.bf16 %v237_v48, %v236_v47  ;;  %v206_v59 = vld [vmem:[#allocation6 + $0x2a0] sm:$0xff] }
  0x8e   :  { %1760 = vmatpush3.bf16.msra.mxu0 %v1759_v25  ;;  %v189_v55 = vld [vmem:[#allocation6 + $0x218] sm:$0xff]  ;;  %v207_v60 = vld [vmem:[#allocation6 + $0x2a8] sm:$0xff]  ;;  %v238_v61 = vld [vmem:[#allocation6 + $0x3a0] sm:$0xff] }
  0x8f   :  { %1762 = vmatprep.subr.bf16.mxu0 %v1761_v27  ;;  %v221_v58 = vld [vmem:[#allocation6 + $0x318] sm:$0xff]  ;;  %v239_v62 = vld [vmem:[#allocation6 + $0x3a8] sm:$0xff]  ;;  %v1803_v63 = vpack.c.bf16 %v189_v55, %v188_v54  ;;  %v1805_v1 = vpack.c.bf16 %v207_v60, %v206_v59  ;;  %v190_v2 = vld [vmem:[#allocation6 + $0x220] sm:$0xff] }
  0x90   :  { %1792 = vmatpush3.bf16.msra.mxu1 %v1791_v26  ;;  %v1835_v0 = vpack.c.bf16 %v221_v58, %v220_v56  ;;  %v191_v3 = vld [vmem:[#allocation6 + $0x228] sm:$0xff]  ;;  %v222_v4 = vld [vmem:[#allocation6 + $0x320] sm:$0xff]  ;;  %v1837_v5 = vpack.c.bf16 %v239_v62, %v238_v61  ;;  %v208_v7 = vld [vmem:[#allocation6 + $0x2b0] sm:$0xff] }
  0x91   :  { %1794 = vmatprep.subr.bf16.mxu1 %v1793_v31  ;;  %v223_v6 = vld [vmem:[#allocation6 + $0x328] sm:$0xff]  ;;  %v209_v8 = vld [vmem:[#allocation6 + $0x2b8] sm:$0xff]  ;;  %v240_v9 = vld [vmem:[#allocation6 + $0x3b0] sm:$0xff]  ;;  %v1807_v11 = vpack.c.bf16 %v191_v3, %v190_v2 }
  0x92   :  { %1764 = vmatpush3.bf16.msra.mxu0 %v1763_v37  ;;  %v241_v10 = vld [vmem:[#allocation6 + $0x3b8] sm:$0xff]  ;;  %v1839_v12 = vpack.c.bf16 %v223_v6, %v222_v4  ;;  %v1809_v13 = vpack.c.bf16 %v209_v8, %v208_v7  ;;  %v192_v14 = vld [vmem:[#allocation6 + $0x230] sm:$0xff]  ;;  %v210_v19 = vld [vmem:[#allocation6 + $0x2c0] sm:$0xff] }
  0x93   :  { %1798 = vmatprep.subr.bf16.mxu0 %v1797_v39  ;;  %v193_v15 = vld [vmem:[#allocation6 + $0x238] sm:$0xff]  ;;  %v224_v16 = vld [vmem:[#allocation6 + $0x330] sm:$0xff]  ;;  %v1841_v17 = vpack.c.bf16 %v241_v10, %v240_v9  ;;  %v211_v20 = vld [vmem:[#allocation6 + $0x2c8] sm:$0xff] }
  0x94   :  { %1796 = vmatpush3.bf16.msra.mxu1 %v1795_v38  ;;  %v225_v18 = vld [vmem:[#allocation6 + $0x338] sm:$0xff]  ;;  %v242_v21 = vld [vmem:[#allocation6 + $0x3c0] sm:$0xff]  ;;  %v243_v22 = vld [vmem:[#allocation6 + $0x3c8] sm:$0xff]  ;;  %v1811_v24 = vpack.c.bf16 %v193_v15, %v192_v14  ;;  %v1813_v27 = vpack.c.bf16 %v211_v20, %v210_v19 }
  0x95   :  { %1830 = vmatprep.subr.bf16.mxu1 %v1829_v43  ;;  %492 = vmatmul.mubr.f32.vlgmr.msra.gmra.mrb[0].mxu0 %v103_v49  ;;  %v108_v23 = vld [vmem:[#allocation3 + $0x28] sm:$0xff]  ;;  %v194_v25 = vld [vmem:[#allocation6 + $0x240] sm:$0xff]  ;;  %v1843_v26 = vpack.c.bf16 %v225_v18, %v224_v16  ;;  %v195_v28 = vld [vmem:[#allocation6 + $0x248] sm:$0xff]  ;;  %v1845_v31 = vpack.c.bf16 %v243_v22, %v242_v21 }
  0x96   :  { %1800 = vmatpush3.bf16.msra.mxu0 %v1799_v50  ;;  %631 = vmatprep.mubr.f32.mxu0 %v108_v23  ;;  %v226_v29 = vld [vmem:[#allocation6 + $0x340] sm:$0xff]  ;;  %v227_v32 = vld [vmem:[#allocation6 + $0x348] sm:$0xff]  ;;  %v212_v33 = vld [vmem:[#allocation6 + $0x2d0] sm:$0xff]  ;;  %v1815_v37 = vpack.c.bf16 %v195_v28, %v194_v25 }
  0x97   :  { %562 = vmatmul.mubr.f32.vlgmr.msra.gmra.mrb[0].mxu1 %v105_v51  ;;  %1802 = vmatprep.subr.bf16.mxu0 %v1801_v53  ;;  %v110_v30 = vld [vmem:[#allocation3 + $0x38] sm:$0xff]  ;;  %v213_v34 = vld [vmem:[#allocation6 + $0x2d8] sm:$0xff]  ;;  %v244_v35 = vld [vmem:[#allocation6 + $0x3d0] sm:$0xff]  ;;  %v1847_v38 = vpack.c.bf16 %v227_v32, %v226_v29 }
  0x98   :  { %1832 = vmatpush3.bf16.msra.mxu1 %v1831_v52  ;;  %701 = vmatprep.mubr.f32.mxu1 %v110_v30  ;;  %v245_v36 = vld [vmem:[#allocation6 + $0x3d8] sm:$0xff]  ;;  %v1817_v39 = vpack.c.bf16 %v213_v34, %v212_v33  ;;  %v196_v40 = vld [vmem:[#allocation6 + $0x250] sm:$0xff]  ;;  %v214_v45 = vld [vmem:[#allocation6 + $0x2e0] sm:$0xff] }
  0x99   :  { %1834 = vmatprep.subr.bf16.mxu1 %v1833_v57  ;;  %v197_v41 = vld [vmem:[#allocation6 + $0x258] sm:$0xff]  ;;  %v228_v42 = vld [vmem:[#allocation6 + $0x350] sm:$0xff]  ;;  %v1849_v43 = vpack.c.bf16 %v245_v36, %v244_v35  ;;  %v215_v46 = vld [vmem:[#allocation6 + $0x2e8] sm:$0xff] }
  0x9a   :  { %1804 = vmatpush3.bf16.msra.mxu0 %v1803_v63  ;;  %v229_v44 = vld [vmem:[#allocation6 + $0x358] sm:$0xff]  ;;  %v246_v47 = vld [vmem:[#allocation6 + $0x3e0] sm:$0xff]  ;;  %v247_v48 = vld [vmem:[#allocation6 + $0x3e8] sm:$0xff]  ;;  %v1819_v49 = vpack.c.bf16 %v197_v41, %v196_v40  ;;  %v1821_v51 = vpack.c.bf16 %v215_v46, %v214_v45 }
  0x9b   :  { %1806 = vmatprep.subr.bf16.mxu0 %v1805_v1  ;;  %v1851_v50 = vpack.c.bf16 %v229_v44, %v228_v42  ;;  %v198_v52 = vld [vmem:[#allocation6 + $0x260] sm:$0xff]  ;;  %v199_v53 = vld [vmem:[#allocation6 + $0x268] sm:$0xff]  ;;  %v1853_v55 = vpack.c.bf16 %v247_v48, %v246_v47  ;;  %v216_v57 = vld [vmem:[#allocation6 + $0x2f0] sm:$0xff] }
  0x9c   :  { %1836 = vmatpush3.bf16.msra.mxu1 %v1835_v0  ;;  %v230_v54 = vld [vmem:[#allocation6 + $0x360] sm:$0xff]  ;;  %v231_v56 = vld [vmem:[#allocation6 + $0x368] sm:$0xff]  ;;  %v217_v58 = vld [vmem:[#allocation6 + $0x2f8] sm:$0xff]  ;;  %v1823_v61 = vpack.c.bf16 %v199_v53, %v198_v52 }
  0x9d   :  { %1838 = vmatprep.subr.bf16.mxu1 %v1837_v5  ;;  %v248_v59 = vld [vmem:[#allocation6 + $0x3f0] sm:$0xff]  ;;  %v249_v60 = vld [vmem:[#allocation6 + $0x3f8] sm:$0xff]  ;;  %v1855_v62 = vpack.c.bf16 %v231_v56, %v230_v54  ;;  %v1825_v63 = vpack.c.bf16 %v217_v58, %v216_v57  ;;  %v266_v5 = vld [vmem:[#allocation6 + $0x480] sm:$0xff] }
  0x9e   :  { %1808 = vmatpush3.bf16.msra.mxu0 %v1807_v11  ;;  %v200_v0 = vld [vmem:[#allocation6 + $0x270] sm:$0xff]  ;;  %v201_v1 = vld [vmem:[#allocation6 + $0x278] sm:$0xff]  ;;  %v1857_v3 = vpack.c.bf16 %v249_v60, %v248_v59  ;;  %v267_v6 = vld [vmem:[#allocation6 + $0x488] sm:$0xff] }
  0x9f   :  { %1810 = vmatprep.subr.bf16.mxu0 %v1809_v13  ;;  %v232_v2 = vld [vmem:[#allocation6 + $0x370] sm:$0xff]  ;;  %v233_v4 = vld [vmem:[#allocation6 + $0x378] sm:$0xff]  ;;  %v298_v7 = vld [vmem:[#allocation6 + $0x580] sm:$0xff]  ;;  %v1827_v9 = vpack.c.bf16 %v201_v1, %v200_v0  ;;  %v1861_v11 = vpack.c.bf16 %v267_v6, %v266_v5 }
  0xa0   :  { %1840 = vmatpush3.bf16.msra.mxu1 %v1839_v12  ;;  %v299_v8 = vld [vmem:[#allocation6 + $0x588] sm:$0xff]  ;;  %v1859_v10 = vpack.c.bf16 %v233_v4, %v232_v2  ;;  %v250_v12 = vld [vmem:[#allocation6 + $0x400] sm:$0xff]  ;;  %v269_v18 = vld [vmem:[#allocation6 + $0x498] sm:$0xff] }
  0xa1   :  { %1842 = vmatprep.subr.bf16.mxu1 %v1841_v17  ;;  %v251_v13 = vld [vmem:[#allocation6 + $0x408] sm:$0xff]  ;;  %v282_v14 = vld [vmem:[#allocation6 + $0x500] sm:$0xff]  ;;  %v1893_v15 = vpack.c.bf16 %v299_v8, %v298_v7  ;;  %v268_v17 = vld [vmem:[#allocation6 + $0x490] sm:$0xff] }
  0xa2   :  { %1812 = vmatpush3.bf16.msra.mxu0 %v1811_v24  ;;  %v283_v16 = vld [vmem:[#allocation6 + $0x508] sm:$0xff]  ;;  %v300_v19 = vld [vmem:[#allocation6 + $0x590] sm:$0xff]  ;;  %v301_v20 = vld [vmem:[#allocation6 + $0x598] sm:$0xff]  ;;  %v1863_v22 = vpack.c.bf16 %v251_v13, %v250_v12  ;;  %v1865_v25 = vpack.c.bf16 %v269_v18, %v268_v17 }
  0xa3   :  { %1814 = vmatprep.subr.bf16.mxu0 %v1813_v27  ;;  %v107_v21 = vld [vmem:[#allocation3 + $0x20] sm:$0xff]  ;;  %v109_v23 = vld [vmem:[#allocation3 + $0x30] sm:$0xff]  ;;  %v1895_v24 = vpack.c.bf16 %v283_v16, %v282_v14  ;;  %v284_v28 = vld [vmem:[#allocation6 + $0x510] sm:$0xff]  ;;  %v1897_v29 = vpack.c.bf16 %v301_v20, %v300_v19 }
  0xa4   :  { %1844 = vmatpush3.bf16.msra.mxu1 %v1843_v26  ;;  %v252_v26 = vld [vmem:[#allocation6 + $0x410] sm:$0xff]  ;;  %v253_v27 = vld [vmem:[#allocation6 + $0x418] sm:$0xff]  ;;  %v271_v32 = vld [vmem:[#allocation6 + $0x4a8] sm:$0xff] }
  0xa5   :  { %1846 = vmatprep.subr.bf16.mxu1 %v1845_v31  ;;  %v285_v30 = vld [vmem:[#allocation6 + $0x518] sm:$0xff]  ;;  %v270_v31 = vld [vmem:[#allocation6 + $0x4a0] sm:$0xff]  ;;  %v303_v34 = vld [vmem:[#allocation6 + $0x5a8] sm:$0xff]  ;;  %v1867_v36 = vpack.c.bf16 %v253_v27, %v252_v26 }
  0xa6   :  { %1816 = vmatpush3.bf16.msra.mxu0 %v1815_v37  ;;  %v302_v33 = vld [vmem:[#allocation6 + $0x5a0] sm:$0xff]  ;;  %v112_v35 = vld [vmem:[#allocation3 + $0x48] sm:$0xff]  ;;  %v255_v41 = vld [vmem:[#allocation6 + $0x428] sm:$0xff] }
  0xa7   :  { %1818 = vmatprep.subr.bf16.mxu0 %v1817_v39  ;;  %v114_v37 = vld [vmem:[#allocation3 + $0x58] sm:$0xff]  ;;  %v1869_v39 = vpack.c.bf16 %v271_v32, %v270_v31  ;;  %v287_v44 = vld [vmem:[#allocation6 + $0x528] sm:$0xff]  ;;  %v272_v45 = vld [vmem:[#allocation6 + $0x4b0] sm:$0xff] }
  0xa8   :  { %1848 = vmatpush3.bf16.msra.mxu1 %v1847_v38  ;;  %v1899_v38 = vpack.c.bf16 %v285_v30, %v284_v28  ;;  %v254_v40 = vld [vmem:[#allocation6 + $0x420] sm:$0xff]  ;;  %v273_v46 = vld [vmem:[#allocation6 + $0x4b8] sm:$0xff]  ;;  %v304_v47 = vld [vmem:[#allocation6 + $0x5b0] sm:$0xff] }
  0xa9   :  { %1850 = vmatprep.subr.bf16.mxu1 %v1849_v43  ;;  %v286_v42 = vld [vmem:[#allocation6 + $0x520] sm:$0xff]  ;;  %v1901_v43 = vpack.c.bf16 %v303_v34, %v302_v33  ;;  %v305_v48 = vld [vmem:[#allocation6 + $0x5b8] sm:$0xff]  ;;  %v256_v52 = vld [vmem:[#allocation6 + $0x430] sm:$0xff] }
  0xaa   :  { %1820 = vmatpush3.bf16.msra.mxu0 %v1819_v49  ;;  %v1871_v49 = vpack.c.bf16 %v255_v41, %v254_v40  ;;  %v257_v53 = vld [vmem:[#allocation6 + $0x438] sm:$0xff]  ;;  %v288_v54 = vld [vmem:[#allocation6 + $0x530] sm:$0xff]  ;;  %v274_v57 = vld [vmem:[#allocation6 + $0x4c0] sm:$0xff] }
  0xab   :  { %1822 = vmatprep.subr.bf16.mxu0 %v1821_v51  ;;  %v1873_v51 = vpack.c.bf16 %v273_v46, %v272_v45  ;;  %v289_v56 = vld [vmem:[#allocation6 + $0x538] sm:$0xff]  ;;  %v275_v58 = vld [vmem:[#allocation6 + $0x4c8] sm:$0xff]  ;;  %v306_v59 = vld [vmem:[#allocation6 + $0x5c0] sm:$0xff] }
  0xac   :  { %1852 = vmatpush3.bf16.msra.mxu1 %v1851_v50  ;;  %v1903_v50 = vpack.c.bf16 %v287_v44, %v286_v42  ;;  %v307_v60 = vld [vmem:[#allocation6 + $0x5c8] sm:$0xff]  ;;  %v258_v0 = vld [vmem:[#allocation6 + $0x440] sm:$0xff]  ;;  %v276_v5 = vld [vmem:[#allocation6 + $0x4d0] sm:$0xff] }
  0xad   :  { %1854 = vmatprep.subr.bf16.mxu1 %v1853_v55  ;;  %v1905_v55 = vpack.c.bf16 %v305_v48, %v304_v47  ;;  %v259_v1 = vld [vmem:[#allocation6 + $0x448] sm:$0xff]  ;;  %v290_v2 = vld [vmem:[#allocation6 + $0x540] sm:$0xff]  ;;  %v277_v6 = vld [vmem:[#allocation6 + $0x4d8] sm:$0xff] }
  0xae   :  { %1824 = vmatpush3.bf16.msra.mxu0 %v1823_v61  ;;  %v1875_v61 = vpack.c.bf16 %v257_v53, %v256_v52  ;;  %v291_v4 = vld [vmem:[#allocation6 + $0x548] sm:$0xff]  ;;  %v308_v7 = vld [vmem:[#allocation6 + $0x5d0] sm:$0xff]  ;;  %v309_v8 = vld [vmem:[#allocation6 + $0x5d8] sm:$0xff] }
  0xaf   :  { %1826 = vmatprep.subr.bf16.mxu0 %v1825_v63  ;;  %v1877_v63 = vpack.c.bf16 %v275_v58, %v274_v57  ;;  %v260_v12 = vld [vmem:[#allocation6 + $0x450] sm:$0xff]  ;;  %v261_v13 = vld [vmem:[#allocation6 + $0x458] sm:$0xff]  ;;  %v278_v17 = vld [vmem:[#allocation6 + $0x4e0] sm:$0xff] }
  0xb0   :  { %1856 = vmatpush3.bf16.msra.mxu1 %v1855_v62  ;;  %v1907_v62 = vpack.c.bf16 %v289_v56, %v288_v54  ;;  %v292_v14 = vld [vmem:[#allocation6 + $0x550] sm:$0xff]  ;;  %v293_v16 = vld [vmem:[#allocation6 + $0x558] sm:$0xff]  ;;  %v279_v18 = vld [vmem:[#allocation6 + $0x4e8] sm:$0xff] }
  0xb1   :  { %1858 = vmatprep.subr.bf16.mxu1 %v1857_v3  ;;  %v1909_v3 = vpack.c.bf16 %v307_v60, %v306_v59  ;;  %v310_v19 = vld [vmem:[#allocation6 + $0x5e0] sm:$0xff]  ;;  %v311_v20 = vld [vmem:[#allocation6 + $0x5e8] sm:$0xff]  ;;  %v281_v30 = vld [vmem:[#allocation6 + $0x4f8] sm:$0xff] }
  0xb2   :  { %1828 = vmatpush3.bf16.msra.mxu0 %v1827_v9  ;;  %v1879_v9 = vpack.c.bf16 %v259_v1, %v258_v0  ;;  %v294_v26 = vld [vmem:[#allocation6 + $0x560] sm:$0xff]  ;;  %v1917_v27 = vpack.c.bf16 %v311_v20, %v310_v19  ;;  %v295_v28 = vld [vmem:[#allocation6 + $0x568] sm:$0xff]  ;;  %v312_v31 = vld [vmem:[#allocation6 + $0x5f0] sm:$0xff] }
  0xb3   :  { %1862 = vmatprep.subr.bf16.mxu0 %v1861_v11  ;;  %v1881_v11 = vpack.c.bf16 %v277_v6, %v276_v5  ;;  %v313_v32 = vld [vmem:[#allocation6 + $0x5f8] sm:$0xff]  ;;  %v1919_v34 = vpack.c.bf16 %v295_v28, %v294_v26  ;;  %v330_v41 = vld [vmem:[#allocation6 + $0x680] sm:$0xff]  ;;  %v331_v42 = vld [vmem:[#allocation6 + $0x688] sm:$0xff] }
  0xb4   :  { %1860 = vmatpush3.bf16.msra.mxu1 %v1859_v10  ;;  %v1911_v10 = vpack.c.bf16 %v291_v4, %v290_v2  ;;  %v297_v40 = vld [vmem:[#allocation6 + $0x578] sm:$0xff]  ;;  %v363_v44 = vld [vmem:[#allocation6 + $0x788] sm:$0xff]  ;;  %v1925_v47 = vpack.c.bf16 %v331_v42, %v330_v41  ;;  %v314_v48 = vld [vmem:[#allocation6 + $0x600] sm:$0xff] }
  0xb5   :  { %1894 = vmatprep.subr.bf16.mxu1 %v1893_v15  ;;  %632 = vmatmul.mubr.f32.vlgmr.msra.gmra.mrb[2].mxu0 %v107_v21  ;;  %v1913_v15 = vpack.c.bf16 %v309_v8, %v308_v7  ;;  %v1883_v21 = vpack.c.bf16 %v261_v13, %v260_v12  ;;  %v347_v52 = vld [vmem:[#allocation6 + $0x708] sm:$0xff]  ;;  %v332_v53 = vld [vmem:[#allocation6 + $0x690] sm:$0xff]  ;;  %v333_v54 = vld [vmem:[#allocation6 + $0x698] sm:$0xff] }
  0xb6   :  { %1864 = vmatpush3.bf16.msra.mxu0 %v1863_v22  ;;  %771 = vmatprep.mubr.f32.mxu0 %v112_v35  ;;  %v1915_v22 = vpack.c.bf16 %v293_v16, %v292_v14  ;;  %v365_v56 = vld [vmem:[#allocation6 + $0x798] sm:$0xff]  ;;  %v111_v57 = vld [vmem:[#allocation3 + $0x40] sm:$0xff]  ;;  %v348_v0 = vld [vmem:[#allocation6 + $0x710] sm:$0xff] }
  0xb7   :  { %702 = vmatmul.mubr.f32.vlgmr.msra.gmra.mrb[2].mxu1 %v109_v23  ;;  %1866 = vmatprep.subr.bf16.mxu0 %v1865_v25  ;;  %v1885_v23 = vpack.c.bf16 %v279_v18, %v278_v17  ;;  %v263_v25 = vld [vmem:[#allocation6 + $0x468] sm:$0xff]  ;;  %v113_v59 = vld [vmem:[#allocation3 + $0x50] sm:$0xff]  ;;  %v366_v5 = vld [vmem:[#allocation6 + $0x7a0] sm:$0xff] }
  0xb8   :  { %1896 = vmatpush3.bf16.msra.mxu1 %v1895_v24  ;;  %841 = vmatprep.mubr.f32.mxu1 %v114_v37  ;;  %v262_v24 = vld [vmem:[#allocation6 + $0x460] sm:$0xff]  ;;  %v265_v37 = vld [vmem:[#allocation6 + $0x478] sm:$0xff]  ;;  %v335_v4 = vld [vmem:[#allocation6 + $0x6a8] sm:$0xff] }
  0xb9   :  { %1898 = vmatprep.subr.bf16.mxu1 %v1897_v29  ;;  %v280_v29 = vld [vmem:[#allocation6 + $0x4f0] sm:$0xff]  ;;  %v1887_v33 = vpack.c.bf16 %v263_v25, %v262_v24  ;;  %v349_v2 = vld [vmem:[#allocation6 + $0x718] sm:$0xff]  ;;  %v367_v6 = vld [vmem:[#allocation6 + $0x7a8] sm:$0xff] }
  0xba   :  { %1868 = vmatpush3.bf16.msra.mxu0 %v1867_v36  ;;  %v1889_v35 = vpack.c.bf16 %v281_v30, %v280_v29  ;;  %v264_v36 = vld [vmem:[#allocation6 + $0x470] sm:$0xff]  ;;  %v318_v12 = vld [vmem:[#allocation6 + $0x620] sm:$0xff]  ;;  %v319_v13 = vld [vmem:[#allocation6 + $0x628] sm:$0xff] }
  0xbb   :  { %1870 = vmatprep.subr.bf16.mxu0 %v1869_v39  ;;  %v1921_v39 = vpack.c.bf16 %v313_v32, %v312_v31  ;;  %v1891_v45 = vpack.c.bf16 %v265_v37, %v264_v36  ;;  %v116_v7 = vld [vmem:[#allocation3 + $0x68] sm:$0xff]  ;;  %v350_v14 = vld [vmem:[#allocation6 + $0x720] sm:$0xff]  ;;  %v351_v16 = vld [vmem:[#allocation6 + $0x728] sm:$0xff] }
  0xbc   :  { %1900 = vmatpush3.bf16.msra.mxu1 %v1899_v38  ;;  %v296_v38 = vld [vmem:[#allocation6 + $0x570] sm:$0xff]  ;;  %v337_v18 = vld [vmem:[#allocation6 + $0x6b8] sm:$0xff]  ;;  %v338_v29 = vld [vmem:[#allocation6 + $0x6c0] sm:$0xff] }
  0xbd   :  { %1902 = vmatprep.subr.bf16.mxu1 %v1901_v43  ;;  %v362_v43 = vld [vmem:[#allocation6 + $0x780] sm:$0xff]  ;;  %v1923_v46 = vpack.c.bf16 %v297_v40, %v296_v38  ;;  %v336_v17 = vld [vmem:[#allocation6 + $0x6b0] sm:$0xff]  ;;  %v369_v20 = vld [vmem:[#allocation6 + $0x7b8] sm:$0xff] }
  0xbe   :  { %1872 = vmatpush3.bf16.msra.mxu0 %v1871_v49  ;;  %v315_v49 = vld [vmem:[#allocation6 + $0x608] sm:$0xff]  ;;  %v368_v19 = vld [vmem:[#allocation6 + $0x7b0] sm:$0xff]  ;;  %v321_v25 = vld [vmem:[#allocation6 + $0x638] sm:$0xff] }
  0xbf   :  { %1874 = vmatprep.subr.bf16.mxu0 %v1873_v51  ;;  %v1957_v51 = vpack.c.bf16 %v363_v44, %v362_v43  ;;  %v1927_v58 = vpack.c.bf16 %v315_v49, %v314_v48  ;;  %v320_v24 = vld [vmem:[#allocation6 + $0x630] sm:$0xff]  ;;  %v353_v28 = vld [vmem:[#allocation6 + $0x738] sm:$0xff]  ;;  %v339_v30 = vld [vmem:[#allocation6 + $0x6c8] sm:$0xff] }
  0xc0   :  { %1904 = vmatpush3.bf16.msra.mxu1 %v1903_v50  ;;  %v346_v50 = vld [vmem:[#allocation6 + $0x700] sm:$0xff]  ;;  %v352_v26 = vld [vmem:[#allocation6 + $0x730] sm:$0xff]  ;;  %v371_v32 = vld [vmem:[#allocation6 + $0x7c8] sm:$0xff] }
  0xc1   :  { %1906 = vmatprep.subr.bf16.mxu1 %v1905_v55  ;;  %v364_v55 = vld [vmem:[#allocation6 + $0x790] sm:$0xff]  ;;  %v1959_v60 = vpack.c.bf16 %v347_v52, %v346_v50  ;;  %v370_v31 = vld [vmem:[#allocation6 + $0x7c0] sm:$0xff]  ;;  %v323_v37 = vld [vmem:[#allocation6 + $0x648] sm:$0xff] }
  0xc2   :  { %1876 = vmatpush3.bf16.msra.mxu0 %v1875_v61  ;;  %v1929_v61 = vpack.c.bf16 %v333_v54, %v332_v53  ;;  %v1961_v1 = vpack.c.bf16 %v365_v56, %v364_v55  ;;  %v322_v36 = vld [vmem:[#allocation6 + $0x640] sm:$0xff]  ;;  %v355_v40 = vld [vmem:[#allocation6 + $0x748] sm:$0xff]  ;;  %v340_v41 = vld [vmem:[#allocation6 + $0x6d0] sm:$0xff] }
  0xc3   :  { %1878 = vmatprep.subr.bf16.mxu0 %v1877_v63  ;;  %v317_v63 = vld [vmem:[#allocation6 + $0x618] sm:$0xff]  ;;  %v354_v38 = vld [vmem:[#allocation6 + $0x740] sm:$0xff]  ;;  %v372_v43 = vld [vmem:[#allocation6 + $0x7d0] sm:$0xff] }
  0xc4   :  { %1908 = vmatpush3.bf16.msra.mxu1 %v1907_v62  ;;  %v316_v62 = vld [vmem:[#allocation6 + $0x610] sm:$0xff]  ;;  %v341_v42 = vld [vmem:[#allocation6 + $0x6d8] sm:$0xff]  ;;  %v342_v53 = vld [vmem:[#allocation6 + $0x6e0] sm:$0xff] }
  0xc5   :  { %1910 = vmatprep.subr.bf16.mxu1 %v1909_v3  ;;  %v334_v3 = vld [vmem:[#allocation6 + $0x6a0] sm:$0xff]  ;;  %v1931_v8 = vpack.c.bf16 %v317_v63, %v316_v62  ;;  %v373_v44 = vld [vmem:[#allocation6 + $0x7d8] sm:$0xff]  ;;  %v324_v48 = vld [vmem:[#allocation6 + $0x650] sm:$0xff] }
  0xc6   :  { %1880 = vmatpush3.bf16.msra.mxu0 %v1879_v9  ;;  %v118_v9 = vld [vmem:[#allocation3 + $0x78] sm:$0xff]  ;;  %v325_v49 = vld [vmem:[#allocation6 + $0x658] sm:$0xff]  ;;  %v356_v50 = vld [vmem:[#allocation6 + $0x750] sm:$0xff] }
  0xc7   :  { %1882 = vmatprep.subr.bf16.mxu0 %v1881_v11  ;;  %v1933_v11 = vpack.c.bf16 %v335_v4, %v334_v3  ;;  %v357_v52 = vld [vmem:[#allocation6 + $0x758] sm:$0xff]  ;;  %v343_v54 = vld [vmem:[#allocation6 + $0x6e8] sm:$0xff]  ;;  %v374_v55 = vld [vmem:[#allocation6 + $0x7e0] sm:$0xff] }
  0xc8   :  { %1912 = vmatpush3.bf16.msra.mxu1 %v1911_v10  ;;  %v1963_v10 = vpack.c.bf16 %v349_v2, %v348_v0  ;;  %v375_v56 = vld [vmem:[#allocation6 + $0x7e8] sm:$0xff]  ;;  %v358_v62 = vld [vmem:[#allocation6 + $0x760] sm:$0xff]  ;;  %v345_v2 = vld [vmem:[#allocation6 + $0x6f8] sm:$0xff] }
  0xc9   :  { %1914 = vmatprep.subr.bf16.mxu1 %v1913_v15  ;;  %v1965_v15 = vpack.c.bf16 %v367_v6, %v366_v5  ;;  %v1981_v63 = vpack.c.bf16 %v375_v56, %v374_v55  ;;  %v359_v0 = vld [vmem:[#allocation6 + $0x768] sm:$0xff]  ;;  %v376_v3 = vld [vmem:[#allocation6 + $0x7f0] sm:$0xff]  ;;  %v377_v4 = vld [vmem:[#allocation6 + $0x7f8] sm:$0xff] }
  0xca   :  { %1884 = vmatpush3.bf16.msra.mxu0 %v1883_v21  ;;  %v1935_v21 = vpack.c.bf16 %v319_v13, %v318_v12  ;;  %v1983_v6 = vpack.c.bf16 %v359_v0, %v358_v62  ;;  %v361_v12 = vld [vmem:[#allocation6 + $0x778] sm:$0xff]  ;;  %v394_v13 = vld [vmem:[#allocation6 + $0x880] sm:$0xff] }
  0xcb   :  { %1886 = vmatprep.subr.bf16.mxu0 %v1885_v23  ;;  %v1937_v23 = vpack.c.bf16 %v337_v18, %v336_v17  ;;  %v378_v18 = vld [vmem:[#allocation6 + $0x800] sm:$0xff]  ;;  %v389_v0 = vld [vmem:[#allocation6 + $0x858] sm:$0xff] }
  0xcc   :  { %1916 = vmatpush3.bf16.msra.mxu1 %v1915_v22  ;;  %v1967_v22 = vpack.c.bf16 %v351_v16, %v350_v14  ;;  %v395_v14 = vld [vmem:[#allocation6 + $0x888] sm:$0xff]  ;;  %v386_v56 = vld [vmem:[#allocation6 + $0x840] sm:$0xff] }
  0xcd   :  { %1918 = vmatprep.subr.bf16.mxu1 %v1917_v27  ;;  %v1969_v27 = vpack.c.bf16 %v369_v20, %v368_v19  ;;  %v1989_v17 = vpack.c.bf16 %v395_v14, %v394_v13  ;;  %v379_v19 = vld [vmem:[#allocation6 + $0x808] sm:$0xff]  ;;  %v396_v20 = vld [vmem:[#allocation6 + $0x890] sm:$0xff] }
  0xce   :  { %1888 = vmatpush3.bf16.msra.mxu0 %v1887_v33  ;;  %v1939_v33 = vpack.c.bf16 %v321_v25, %v320_v24  ;;  %v115_v24 = vld [vmem:[#allocation3 + $0x60] sm:$0xff]  ;;  %v1991_v25 = vpack.c.bf16 %v379_v19, %v378_v18 }
  0xcf   :  { %1890 = vmatprep.subr.bf16.mxu0 %v1889_v35  ;;  %v1941_v35 = vpack.c.bf16 %v339_v30, %v338_v29  ;;  %v381_v29 = vld [vmem:[#allocation6 + $0x818] sm:$0xff]  ;;  %v398_v30 = vld [vmem:[#allocation6 + $0x8a0] sm:$0xff]  ;;  %v119_v14 = vld [vmem:[#allocation3 + $0x80] sm:$0xff] }
  0xd0   :  { %1920 = vmatpush3.bf16.msra.mxu1 %v1919_v34  ;;  %v1971_v34 = vpack.c.bf16 %v353_v28, %v352_v26  ;;  %v117_v26 = vld [vmem:[#allocation3 + $0x70] sm:$0xff]  ;;  %v380_v28 = vld [vmem:[#allocation6 + $0x810] sm:$0xff] }
  0xd1   :  { %1922 = vmatprep.subr.bf16.mxu1 %v1921_v39  ;;  %v1973_v39 = vpack.c.bf16 %v371_v32, %v370_v31  ;;  %v399_v32 = vld [vmem:[#allocation6 + $0x8a8] sm:$0xff] }
  0xd2   :  { %1892 = vmatpush3.bf16.msra.mxu0 %v1891_v45  ;;  %v1943_v45 = vpack.c.bf16 %v323_v37, %v322_v36  ;;  %v120_v36 = vld [vmem:[#allocation3 + $0x88] sm:$0xff]  ;;  %v1995_v37 = vpack.c.bf16 %v381_v29, %v380_v28  ;;  %v1137_v28 = vld [vmem:[#allocation9 + $0x48] sm:$0xff] }
  0xd3   :  { %1926 = vmatprep.subr.bf16.mxu0 %v1925_v47  ;;  %v1945_v47 = vpack.c.bf16 %v341_v42, %v340_v41  ;;  %v400_v41 = vld [vmem:[#allocation6 + $0x8b0] sm:$0xff] }
  0xd4   :  { %1924 = vmatpush3.bf16.msra.mxu1 %v1923_v46  ;;  %v1975_v46 = vpack.c.bf16 %v355_v40, %v354_v38  ;;  %v1997_v38 = vpack.c.bf16 %v399_v32, %v398_v30  ;;  %v383_v40 = vld [vmem:[#allocation6 + $0x828] sm:$0xff] }
  0xd5   :  { %1958 = vmatprep.subr.bf16.mxu1 %v1957_v51  ;;  %772 = vmatmul.mubr.f32.vlgmr.msra.gmra.mrb[4].mxu0 %v111_v57  ;;  %v1977_v51 = vpack.c.bf16 %v373_v44, %v372_v43  ;;  %v1947_v57 = vpack.c.bf16 %v325_v49, %v324_v48  ;;  %v401_v43 = vld [vmem:[#allocation6 + $0x8b8] sm:$0xff]  ;;  %v414_v44 = vld [vmem:[#allocation6 + $0x920] sm:$0xff]  ;;  %v384_v49 = vld [vmem:[#allocation6 + $0x830] sm:$0xff] }
  0xd6   :  { %1928 = vmatpush3.bf16.msra.mxu0 %v1927_v58  ;;  %911 = vmatprep.mubr.f32.mxu0 %v116_v7  ;;  %v1979_v58 = vpack.c.bf16 %v357_v52, %v356_v50  ;;  %v2001_v48 = vpack.c.bf16 %v401_v43, %v400_v41  ;;  %v385_v50 = vld [vmem:[#allocation6 + $0x838] sm:$0xff]  ;;  %v402_v52 = vld [vmem:[#allocation6 + $0x8c0] sm:$0xff]  ;;  %v1131_v19 = vld [vmem:[#allocation9 + $0x18] sm:$0xff] }
  0xd7   :  { %842 = vmatmul.mubr.f32.vlgmr.msra.gmra.mrb[4].mxu1 %v113_v59  ;;  %1930 = vmatprep.subr.bf16.mxu0 %v1929_v61  ;;  %v1949_v59 = vpack.c.bf16 %v343_v54, %v342_v53  ;;  %v327_v61 = vld [vmem:[#allocation6 + $0x668] sm:$0xff]  ;;  %v2003_v54 = vpack.c.bf16 %v385_v50, %v384_v49 }
  0xd8   :  { %1960 = vmatpush3.bf16.msra.mxu1 %v1959_v60  ;;  %981 = vmatprep.mubr.f32.mxu1 %v118_v9  ;;  %v326_v60 = vld [vmem:[#allocation6 + $0x660] sm:$0xff]  ;;  %v329_v9 = vld [vmem:[#allocation6 + $0x678] sm:$0xff]  ;;  %v403_v53 = vld [vmem:[#allocation6 + $0x8c8] sm:$0xff] }
  0xd9   :  { %1962 = vmatprep.subr.bf16.mxu1 %v1961_v1  ;;  %v344_v1 = vld [vmem:[#allocation6 + $0x6f0] sm:$0xff]  ;;  %v1951_v5 = vpack.c.bf16 %v327_v61, %v326_v60  ;;  %v2005_v55 = vpack.c.bf16 %v403_v53, %v402_v52  ;;  %v405_v60 = vld [vmem:[#allocation6 + $0x8d8] sm:$0xff]  ;;  %v1138_v30 = vld [vmem:[#allocation9 + $0x50] sm:$0xff] }
  0xda   :  { %1932 = vmatpush3.bf16.msra.mxu0 %v1931_v8  ;;  %v1953_v7 = vpack.c.bf16 %v345_v2, %v344_v1  ;;  %v328_v8 = vld [vmem:[#allocation6 + $0x670] sm:$0xff]  ;;  %v406_v1 = vld [vmem:[#allocation6 + $0x8e0] sm:$0xff]  ;;  %v407_v2 = vld [vmem:[#allocation6 + $0x8e8] sm:$0xff] }
  0xdb   :  { %1934 = vmatprep.subr.bf16.mxu0 %v1933_v11  ;;  %v1985_v11 = vpack.c.bf16 %v377_v4, %v376_v3  ;;  %v2013_v4 = vpack.c.bf16 %v407_v2, %v406_v1 }
  0xdc   :  { %1964 = vmatpush3.bf16.msra.mxu1 %v1963_v10  ;;  %v360_v10 = vld [vmem:[#allocation6 + $0x770] sm:$0xff] }
  0xdd   :  { %1966 = vmatprep.subr.bf16.mxu1 %v1965_v15  ;;  %v1955_v15 = vpack.c.bf16 %v329_v9, %v328_v8  ;;  %v1987_v16 = vpack.c.bf16 %v361_v12, %v360_v10  ;;  %v409_v8 = vld [vmem:[#allocation6 + $0x8f8] sm:$0xff] }
  0xde   :  { %1936 = vmatpush3.bf16.msra.mxu0 %v1935_v21  ;;  %v397_v21 = vld [vmem:[#allocation6 + $0x898] sm:$0xff] }
  0xdf   :  { %1938 = vmatprep.subr.bf16.mxu0 %v1937_v23  ;;  %v411_v23 = vld [vmem:[#allocation6 + $0x908] sm:$0xff]  ;;  %v393_v12 = vld [vmem:[#allocation6 + $0x878] sm:$0xff] }
  0xe0   :  { %1968 = vmatpush3.bf16.msra.mxu1 %v1967_v22  ;;  %v410_v22 = vld [vmem:[#allocation6 + $0x900] sm:$0xff] }
  0xe1   :  { %1970 = vmatprep.subr.bf16.mxu1 %v1969_v27  ;;  %v1993_v27 = vpack.c.bf16 %v397_v21, %v396_v20  ;;  %v2022_v31 = vpack.c.bf16 %v411_v23, %v410_v22  ;;  %v1132_v21 = vld [vmem:[#allocation9 + $0x20] sm:$0xff]  ;;  %v1133_v22 = vld [vmem:[#allocation9 + $0x28] sm:$0xff] }
  0xe2   :  { %1940 = vmatpush3.bf16.msra.mxu0 %v1939_v33  ;;  %v2244_v33 = vmov 0.0|0.0   ;;  %v2037_v23 = vpack.c.bf16 %v1133_v22, %v1132_v21 }
  0xe3   :  { %1942 = vmatprep.subr.bf16.mxu0 %v1941_v35  ;;  %v413_v35 = vld [vmem:[#allocation6 + $0x918] sm:$0xff] }
  0xe4   :  { %1972 = vmatpush3.bf16.msra.mxu1 %v1971_v34  ;;  %v412_v34 = vld [vmem:[#allocation6 + $0x910] sm:$0xff] }
  0xe5   :  { %1974 = vmatprep.subr.bf16.mxu1 %v1973_v39  ;;  %v382_v39 = vld [vmem:[#allocation6 + $0x820] sm:$0xff]  ;;  %v2025_v42 = vpack.c.bf16 %v413_v35, %v412_v34  ;;  %v1140_v35 = vld [vmem:[#allocation9 + $0x60] sm:$0xff] }
  0xe6   :  { %1944 = vmatpush3.bf16.msra.mxu0 %v1943_v45  ;;  %v415_v45 = vld [vmem:[#allocation6 + $0x928] sm:$0xff] }
  0xe7   :  { %1946 = vmatprep.subr.bf16.mxu0 %v1945_v47  ;;  %v1999_v47 = vpack.c.bf16 %v383_v40, %v382_v39 }
  0xe8   :  { %1976 = vmatpush3.bf16.msra.mxu1 %v1975_v46  ;;  %v2246_v46 = vmov 0.0  }
  0xe9   :  { %1978 = vmatprep.subr.bf16.mxu1 %v1977_v51  ;;  %v2028_v51 = vpack.c.bf16 %v415_v45, %v414_v44  ;;  %v1142_v45 = vld [vmem:[#allocation9 + $0x70] sm:$0xff] }
  0xea   :  { %1948 = vmatpush3.bf16.msra.mxu0 %v1947_v57  ;;  %v387_v57 = vld [vmem:[#allocation6 + $0x848] sm:$0xff] }
  0xeb   :  { %1950 = vmatprep.subr.bf16.mxu0 %v1949_v59  ;;  %v404_v59 = vld [vmem:[#allocation6 + $0x8d0] sm:$0xff]  ;;  %v2007_v61 = vpack.c.bf16 %v387_v57, %v386_v56 }
  0xec   :  { %1980 = vmatpush3.bf16.msra.mxu1 %v1979_v58  ;;  %v121_v58 = vld [vmem:[#allocation3 + $0x90] sm:$0xff]  ;;  %v2009_v62 = vpack.c.bf16 %v405_v60, %v404_v59 }
  0xed   :  { %1982 = vmatprep.subr.bf16.mxu1 %v1981_v63  ;;  %v388_v63 = vld [vmem:[#allocation6 + $0x850] sm:$0xff] }
  0xee   :  { %1952 = vmatpush3.bf16.msra.mxu0 %v1951_v5  ;;  %v2011_v3 = vpack.c.bf16 %v389_v0, %v388_v63  ;;  %v390_v5 = vld [vmem:[#allocation6 + $0x860] sm:$0xff] }
  0xef   :  { %1954 = vmatprep.subr.bf16.mxu0 %v1953_v7  ;;  %v408_v7 = vld [vmem:[#allocation6 + $0x8f0] sm:$0xff] }
  0xf0   :  { %1984 = vmatpush3.bf16.msra.mxu1 %v1983_v6  ;;  %v391_v6 = vld [vmem:[#allocation6 + $0x868] sm:$0xff]  ;;  %v2017_v10 = vpack.c.bf16 %v409_v8, %v408_v7 }
  0xf1   :  { %1986 = vmatprep.subr.bf16.mxu1 %v1985_v11  ;;  %v2015_v9 = vpack.c.bf16 %v391_v6, %v390_v5  ;;  %v392_v11 = vld [vmem:[#allocation6 + $0x870] sm:$0xff] }
  0xf2   :  { %1956 = vmatpush3.bf16.msra.mxu0 %v1955_v15  ;;  %v2019_v13 = vpack.c.bf16 %v393_v12, %v392_v11  ;;  %v1128_v15 = vld [vmem:[#allocation9] sm:$0xff] }
  0xf3   :  { %1990 = vmatprep.subr.bf16.mxu0 %v1989_v17  ;;  %v1130_v17 = vld [vmem:[#allocation9 + $0x10] sm:$0xff] }
  0xf4   :  { %1988 = vmatpush3.bf16.msra.mxu1 %v1987_v16  ;;  %v1129_v16 = vld [vmem:[#allocation9 + $0x8] sm:$0xff]  ;;  %v2034_v20 = vpack.c.bf16 %v1131_v19, %v1130_v17  ;;  %v2247_v17 = vmov 0  }
  0xf5   :  { %2021 = vmatprep.subr.bf16.mxu1 %v2244_v33  ;;  %912 = vmatmul.mubr.f32.vlgmr.msra.gmra.mrb[6].mxu0 %v115_v24  ;;  %v2031_v18 = vpack.c.bf16 %v1129_v16, %v1128_v15  ;;  %v1134_v24 = vld [vmem:[#allocation9 + $0x30] sm:$0xff] }
  0xf6   :  { %1992 = vmatpush3.bf16.msra.mxu0 %v1991_v25  ;;  %1051 = vmatprep.mubr.f32.mxu0 %v120_v36  ;;  %v1135_v25 = vld [vmem:[#allocation9 + $0x38] sm:$0xff]  ;;  %v1141_v36 = vld [vmem:[#allocation9 + $0x68] sm:$0xff]  ;;  %v1223_v16 = vld [vmem:[#allocation2] sm:$0x1] }
  0xf7   :  { %982 = vmatmul.mubr.f32.vlgmr.msra.gmra.mrb[6].mxu1 %v117_v26  ;;  %1994 = vmatprep.subr.bf16.mxu0 %v1993_v27  ;;  %v2040_v26 = vpack.c.bf16 %v1135_v25, %v1134_v24  ;;  %v1136_v27 = vld [vmem:[#allocation9 + $0x40] sm:$0xff]  ;;  %v2049_v40 = vpack.c.bf16 %v1141_v36, %v1140_v35  ;;  %v1229_v24 = vlaneseq }
  0xf8   :  { %2023 = vmatpush3.bf16.msra.mxu1 %v2022_v31  ;;  %1690 = vmatprep.mubr.msk.f32.mxu1 %vm2245_vm0, %v2246_v46  ;;  %v2043_v29 = vpack.c.bf16 %v1137_v28, %v1136_v27  ;;  %v1139_v31 = vld [vmem:[#allocation9 + $0x58] sm:$0xff] }
  0xf9   :  { %2024 = vmatprep.subr.bf16.mxu1 %v2244_v33  ;;  %v2046_v32 = vpack.c.bf16 %v1139_v31, %v1138_v30  ;;  %2067 = vset.pattern.permute.xlu0 %v2247_v17  ;;  %v1230_v25 = vshrl.u32 %v1229_v24, 7 }
  0xfa   :  { %1996 = vmatpush3.bf16.msra.mxu0 %v1995_v37  ;;  %v1333_v37 = vld [vmem:[#allocation8] ss:$0 sm:$0xff]  ;;  %1226 = vperm.xlu0 %2067, %v1223_v16  }
  0xfb   :  { %1998 = vmatprep.subr.bf16.mxu0 %v1997_v38 }
  0xfc   :  { %2026 = vmatpush3.bf16.msra.mxu1 %v2025_v42 }
  0xfd   :  { %2027 = vmatprep.subr.bf16.mxu1 %v2244_v33 }
  0xfe   :  { %2000 = vmatpush3.bf16.msra.mxu0 %v1999_v47 }
  0xff   :  { %2002 = vmatprep.subr.bf16.mxu0 %v2001_v48 }
 0x100   :  { %2029 = vmatpush3.bf16.msra.mxu1 %v2028_v51 }
 0x101   :  { %2030 = vmatprep.subr.bf16.mxu1 %v2244_v33 }
 0x102   :  { %2004 = vmatpush3.bf16.msra.mxu0 %v2003_v54 }
 0x103   :  { %1691 = vmatmul.mubr.msk.f32.vlgmr.msra.gmra.mrb[8].mxu1 %vm423_vm1, %v121_v58  ;;  %2006 = vmatprep.subr.bf16.mxu0 %v2005_v55 }
 0x104   :  { %1725 = vmatprep.mubr.msk.f32.mxu1 %vm2245_vm0, %v2246_v46  ;;  %2032 = vmatpush3.bf16.msra.mxu1 %v2031_v18  ;;  %v1335_v18 = vld [vmem:[#allocation11] ss:$0 sm:$0xff] }
 0x105   :  { %2033 = vmatprep.subr.bf16.mxu1 %v2244_v33 }
 0x106   :  { %2008 = vmatpush3.bf16.msra.mxu0 %v2007_v61 }
 0x107   :  { %2010 = vmatprep.subr.bf16.mxu0 %v2009_v62 }
 0x108   :  { %2035 = vmatpush3.bf16.msra.mxu1 %v2034_v20 }
 0x109   :  { %2036 = vmatprep.subr.bf16.mxu1 %v2244_v33 }
 0x10a   :  { %2012 = vmatpush3.bf16.msra.mxu0 %v2011_v3 }
 0x10b   :  { %2014 = vmatprep.subr.bf16.mxu0 %v2013_v4 }
 0x10c   :  { %2038 = vmatpush3.bf16.msra.mxu1 %v2037_v23  ;;  %v1222_v23 = vld [vmem:[#allocation12] sm:$0x1] }
 0x10d   :  { %2039 = vmatprep.subr.bf16.mxu1 %v2244_v33 }
 0x10e   :  { %2016 = vmatpush3.bf16.msra.mxu0 %v2015_v9 }
 0x10f   :  { %2018 = vmatprep.subr.bf16.mxu0 %v2017_v10 }
 0x110   :  { %2041 = vmatpush3.bf16.msra.mxu1 %v2040_v26  ;;  %v1231_v26 = vsub.s32 0, %v1230_v25 }
 0x111   :  { %2042 = vmatprep.subr.bf16.mxu1 %v2244_v33 }
 0x112   :  { %2020 = vmatpush3.bf16.msra.mxu0 %v2019_v13 }
 0x113   :  { %1728 = vmatprep.subr.mxu0 %v2246_v46 }
 0x114   :  { %2044 = vmatpush3.bf16.msra.mxu1 %v2043_v29 }
 0x115   :  { %1052 = vmatmul.mubr.f32.vlgmr.msra.gmra.mrb[8].mxu0 %v119_v14  ;;  %2045 = vmatprep.subr.bf16.mxu1 %v2244_v33 }
 0x116   :  { %1730 = vmatprep.mubr.msk.f32.mxu0 %vm2245_vm0, %v2246_v46  ;;  %v1143_v46 = vld [vmem:[#allocation9 + $0x78] sm:$0xff] }
 0x117   :  { %v2052_v47 = vpack.c.bf16 %v1143_v46, %v1142_v45 }
 0x118   :  { %2047 = vmatpush3.bf16.msra.mxu1 %v2046_v32 }
 0x119   :  { %2048 = vmatprep.subr.bf16.mxu1 %v2244_v33 }
 0x11c   :  { %2050 = vmatpush3.bf16.msra.mxu1 %v2049_v40 }
 0x11d   :  { %2051 = vmatprep.subr.bf16.mxu1 %v2244_v33 }
 0x120   :  { %2053 = vmatpush3.bf16.msra.mxu1 %v2052_v47 }
 0x168   :  { %v1369_v34 = vpop.f32.mrb[0].mxu0 }
 0x169   :  { %v1370_v38 = vpop.f32.mrb[1].mxu0 }
 0x16a   :  { %v1404_v39 = vpop.f32.mrb[0].mxu1  ;;  %v1371_v41 = vadd.f32 %v1370_v38, %v1369_v34 }
 0x16b   :  { %v1405_v42 = vpop.f32.mrb[1].mxu1 }
 0x16c   :  { %v1406_v43 = vadd.f32 %v1405_v42, %v1404_v39  ;;  %v494_v44 = vadd.f32 %v1371_v41, %v1333_v37 }
 0x16e   :  { %v564_v48 = vadd.f32 %v1406_v43, %v494_v44 }
 0x179   :  { %v1227_v27 = vpop.permute.xlu0 %1226 }
 0x17a   :  { %v1232_v28 = vrot.slane %v1227_v27, %v1231_v26 }
 0x188   :  { %v1439_v49 = vpop.f32.mrb[2].mxu0 }
 0x189   :  { %v1440_v50 = vpop.f32.mrb[3].mxu0 }
 0x18a   :  { %v1474_v51 = vpop.f32.mrb[2].mxu1  ;;  %v1441_v52 = vadd.f32 %v1440_v50, %v1439_v49 }
 0x18b   :  { %v1475_v53 = vpop.f32.mrb[3].mxu1 }
 0x18c   :  { %v1476_v54 = vadd.f32 %v1475_v53, %v1474_v51  ;;  %v634_v55 = vadd.f32 %v1441_v52, %v564_v48 }
 0x18e   :  { %v704_v56 = vadd.f32 %v1476_v54, %v634_v55 }
 0x1a8   :  { %v1509_v57 = vpop.f32.mrb[4].mxu0 }
 0x1a9   :  { %v1510_v58 = vpop.f32.mrb[5].mxu0 }
 0x1aa   :  { %v1544_v59 = vpop.f32.mrb[4].mxu1  ;;  %v1511_v60 = vadd.f32 %v1510_v58, %v1509_v57 }
 0x1ab   :  { %v1545_v61 = vpop.f32.mrb[5].mxu1 }
 0x1ac   :  { %v1546_v62 = vadd.f32 %v1545_v61, %v1544_v59  ;;  %v774_v33 = vadd.f32 %v1511_v60, %v704_v56 }
 0x1ae   :  { %v844_v63 = vadd.f32 %v1546_v62, %v774_v33 }
 0x1c8   :  { %v1579_v0 = vpop.f32.mrb[6].mxu0 }
 0x1c9   :  { %v1580_v1 = vpop.f32.mrb[7].mxu0 }
 0x1ca   :  { %v1614_v2 = vpop.f32.mrb[6].mxu1  ;;  %v1581_v3 = vadd.f32 %v1580_v1, %v1579_v0 }
 0x1cb   :  { %v1615_v4 = vpop.f32.mrb[7].mxu1 }
 0x1cc   :  { %v1616_v5 = vadd.f32 %v1615_v4, %v1614_v2  ;;  %v914_v6 = vadd.f32 %v1581_v3, %v844_v63 }
 0x1ce   :  { %v984_v7 = vadd.f32 %v1616_v5, %v914_v6 }
 0x1d6   :  { %v1123_v8 = vpop.f32.mrb[8].mxu1 }
 0x1d7   :  { %v1692_v9 = vpop.f32.mrb[9].mxu1 }
 0x1e8   :  { %v1649_v10 = vpop.f32.mrb[8].mxu0 }
 0x1e9   :  { %v1650_v11 = vpop.f32.mrb[9].mxu0 }
 0x1ea   :  { %v1651_v12 = vadd.f32 %v1650_v11, %v1649_v10 }
 0x1ec   :  { %v1054_v13 = vadd.f32 %v1651_v12, %v984_v7 }
 0x1ee   :  { %v1124_v14 = vadd.f32 %v1123_v8, %v1054_v13 }
 0x1f0   :  { %v1127_v15 = vmax.f32 %v1124_v14, 0.0 }
 0x1f2   :  { %1726 = vmatmul.mubr.f32.vlgmr.msra.gmra.mrb[10].mxu1 %v1127_v15 }
 0x2c5   :  { %v1217_v19 = vpop.f32.mrb[10].mxu1 }
 0x2c6   :  { %v1218_v20 = vadd.f32 %v1335_v18, %v1217_v19  ;;  %v1727_v21 = vpop.f32.mrb[11].mxu1 }
 0x2c8   :  { %v1221_v22 = vmax.f32 %v1218_v20, 0.0 }
 0x2ca   :  { %1729 = vmatpush3.xpose.msra.mxu0 %v1221_v22 }
 0x2cd   :  { %1731 = vmatmul.mubr.f32.vlgmr.msra.gmra.mrb[10].mxu0 %v1222_v23 }
 0x3a0   :  { %v1299_v29 = vpop.f32.mrb[10].mxu0 }
 0x3a1   :  { %v1300_v30 = vadd.f32 %v1299_v29, %v1232_v28  ;;  %v1732_v31 = vpop.f32.mrb[11].mxu0 }
 0x3a3   :  { %v1336_v32 = vmul.f32 -1.442695, %v1300_v30 }
 0x3a5   :  { %2068 = vpow2.f32 %v1336_v32 }
 0x3af   :  { %v2069_v34 = vpop.eup %2068 }
 0x3b0   :  { %v1306_v35 = vadd.f32 1.0, %v2069_v34 }
 0x3b2   :  { %2070 = vrcp.f32 %v1306_v35 }
 0x3bc   :  { %v2071_v36 = vpop.eup %2070 }
 0x3bd   :  { %v1312_v37 = vrot.slane %v2071_v36, %v1231_v26 }
 0x3bf   :  { %1314 = vst.msk [vmem:[#allocation14] sm:$0xff] %vm1313_vm2, %v1312_v37 }
 0x3c0   :  { %2215 = shalt.err (!%p2212_p10)
}
 0x3c1   :  { %s2216_s1 = scalar_lea.hbm %s2397_s7, 128 }
 0x3c2   :  { %p2217_p11 = scmp.ne.s32.totalorder %s2397_s7, %s2216_s1  ;;  %p2220_p12 = scmp.lt.u32.totalorder %s2216_s1, %s2397_s7 }
 0x3c4   :  { %p2222_p13 = pnand %p2220_p12, %p2217_p11 }
 0x3c6   :  { %2225 = shalt.err (!%p2222_p13)
}
 0x3c7   :  { %1324 = dma.vmem_to_hbm [thread:$0]  %s1322_s25, 128, %s2397_s7, [#allocation5]  }
 0x3c8   :  { %2234 = dma.done.wait [#allocation5], 128  }
 0x3c9   :  { %2235 = vsyncadd [#allocation5], 4294967168 }
 0x3ca   :  { %1328 = vsyncpa [#allocation4], 1 }
 0x3cb   :  { %1329 = vsyncpa [#allocation7], 1 }
 0x3cc   :  { %1330 = vsyncpa [#allocation10], 1 }
 0x3cd   :  { %1331 = vsyncpa [#allocation13], 1 }
 0x3ce   :  { %1332 = vsyncpa [#allocation5], 1 }

</bundles_post_ra>
